<compile_context>
chip_gen: v7x
topology: tpu7x:2x2x1
jax: 0.10.0
libtpu: 0.0.40
codegen_flags: <defaults>
</compile_context>

<pallas_src>
import functools

import jax
import jax.numpy as jnp
from jax.experimental import pallas as pl
from jax.experimental.pallas import tpu as pltpu


def conv3d_kernel(x_ref, w_ref, b_ref, o_ref, *, K, TD, H, W, Cout, activation):
    # x_ref: (1, Dp, H, K*Wp*Cin)   padded input, kh/W/Cin pre-gathered in lanes
    # w_ref: (K, K*Wp*Cin, W*Cout)  banded (block-Toeplitz) weights, kd-indexed
    # b_ref: (1, W*Cout)            f32 bias tiled across W
    # o_ref: (1, TD, H, W*Cout)     lane-dense output block
    kwc = x_ref.shape[-1]
    w_cout = W * Cout
    d0 = pl.multiple_of(pl.program_id(1) * TD, TD)

    # Back-to-back MXU matmuls; the only per-tap shift is on the leading D axis
    # (cheap address shift, no sublane relayout).
    acc = jnp.zeros((TD * H, w_cout), jnp.float32)
    for kd in range(K):
        a = x_ref[0, pl.ds(d0 + kd, TD), :, :]          # (TD, H, K*Wp*Cin)
        acc = acc + jnp.dot(a.reshape(TD * H, kwc), w_ref[kd],
                            preferred_element_type=jnp.float32)

    # f32 epilogue (bias + activation), then cast once on store.
    acc = acc + b_ref[...]
    if activation == "relu":
        acc = jnp.maximum(acc, 0.0)
    elif activation == "sigmoid":
        acc = jax.nn.sigmoid(acc)
    o_ref[...] = acc.reshape(1, TD, H, w_cout).astype(o_ref.dtype)


def _largest_divisor_leq(n, cap):
    for t in range(min(n, cap), 0, -1):
        if n % t == 0:
            return t
    return 1


def conv_block_3d(x, weight, bias, activation=None, compute_dtype=None):
    """x: (N, Cin, D, H, W) NCDHW; weight: (Cout, Cin, K, K, K); bias: (Cout,).

    Returns (N, Cout, D, H, W), matching ConvBlock3D(padding='same', stride=1).
    compute_dtype: dtype of the MXU operands (e.g. jnp.bfloat16 for the
    performance configuration); accumulation/epilogue are always f32 and the
    output dtype matches x.dtype.
    """
    N, Cin, D, H, W = x.shape
    Cout, _, K, _, _ = weight.shape
    assert K % 2 == 1, "padding='same' path implemented for odd kernel sizes"
    p = K // 2
    Dp, Wp = D + 2 * p, W + 2 * p
    cdt = jnp.dtype(compute_dtype) if compute_dtype is not None else x.dtype

    # ---- JAX glue: NCDHW -> padded NDHWC, then gather kh into lanes --------
    x_ndhwc = jnp.transpose(x, (0, 2, 3, 4, 1))
    x_pad = jnp.pad(x_ndhwc, ((0, 0), (p, p), (p, p), (p, p), (0, 0)))
    # x_m[n, dp, h, kh*Wp*Cin + wp*Cin + ci] = x_pad[n, dp, h+kh, wp, ci]
    x_kh = jnp.stack([x_pad[:, :, kh:kh + H] for kh in range(K)], axis=3)
    KWC = K * Wp * Cin
    x_m = x_kh.reshape(N, Dp, H, KWC).astype(cdt)

    # ---- banded weight: fold (kh, W-conv, Cin) into one contraction --------
    # TODO(synk): W-tile this construction (or switch to lane-rolls against
    #             compact (Cin,Cout) slices) at large W*Cin*Cout; it scales as
    #             O(K^2 * Wp * W * Cin * Cout).
    wt = jnp.transpose(weight, (2, 3, 4, 1, 0))                  # (K,K,K,Cin,Cout)
    kw_off = jnp.arange(Wp)[:, None] - jnp.arange(W)[None, :]    # (Wp, W)
    valid = (kw_off >= 0) & (kw_off < K)
    kw_idx = jnp.clip(kw_off, 0, K - 1)
    B = wt[:, :, kw_idx, :, :]                                   # (K,K,Wp,W,Cin,Cout)
    B = jnp.where(valid[None, None, :, :, None, None], B, 0)
    B = jnp.transpose(B, (0, 1, 2, 4, 3, 5)).reshape(K, KWC, W * Cout).astype(cdt)

    WCout = W * Cout
    bias_t = jnp.tile(bias.astype(jnp.float32), W).reshape(1, WCout)

    # D-tile: aim for an MXU M-dim of TD*H = 128 (full MXU pass height) while
    # keeping the live f32 accumulator at <= 16 vregs.
    td_cap = max(1, 128 // H) if H <= 128 else 1
    TD = _largest_divisor_leq(D, td_cap)

    kernel = functools.partial(conv3d_kernel, K=K, TD=TD, H=H, W=W,
                               Cout=Cout, activation=activation)

    # VMEM budget: double-buffered input/output blocks + single-buffered B.
    in_item = jnp.dtype(cdt).itemsize
    out_item = jnp.dtype(x.dtype).itemsize
    est_vmem = (2 * Dp * H * KWC * in_item
                + K * KWC * WCout * in_item
                + 2 * TD * H * WCout * out_item
                + 2 * WCout * 4)
    vmem_limit = int(min(64 << 20, max(32 << 20, 2 * est_vmem)))

    def make_call(weight_pipeline_mode):
        if weight_pipeline_mode is None:
            w_spec = pl.BlockSpec((K, KWC, WCout), lambda n, d: (0, 0, 0))
        else:
            w_spec = pl.BlockSpec((K, KWC, WCout), lambda n, d: (0, 0, 0),
                                  pipeline_mode=weight_pipeline_mode)
        return pl.pallas_call(
            kernel,
            out_shape=jax.ShapeDtypeStruct((N, D, H, WCout), x.dtype),
            grid=(N, D // TD),
            in_specs=[
                pl.BlockSpec((1, Dp, H, KWC), lambda n, d: (n, 0, 0, 0)),
                w_spec,
                pl.BlockSpec((1, WCout), lambda n, d: (0, 0)),
            ],
            out_specs=pl.BlockSpec((1, TD, H, WCout), lambda n, d: (n, d, 0, 0)),
            compiler_params=pltpu.CompilerParams(
                dimension_semantics=("parallel", "parallel"),
                vmem_limit_bytes=vmem_limit),
        )

    try:
        # B's index_map is constant -> single-buffer it (halves its VMEM use).
        out_m = make_call(pl.Buffered(1))(x_m, B, bias_t)
    except Exception:
        # Fallback for builds that reject single-buffered pipelined inputs.
        out_m = make_call(None)(x_m, B, bias_t)

    out = out_m.reshape(N, D, H, W, Cout)
    return jnp.transpose(out, (0, 4, 1, 2, 3))


def _reference_conv3d(x, weight, bias, activation=None):
    out = jax.lax.conv_general_dilated(
        x, weight, window_strides=(1, 1, 1), padding="SAME",
        dimension_numbers=("NCDHW", "OIDHW", "NCDHW"))
    out = out + bias.reshape(1, -1, 1, 1, 1)
    if activation == "relu":
        out = jnp.maximum(out, 0.0)
    elif activation == "sigmoid":
        out = jax.nn.sigmoid(out)
    return out


if __name__ == "__main__":
    # Small shapes consistent with a Conv3d forward: N=2, Cin=4, D=8, H=W=16.
    N, Cin, Cout, K = 2, 4, 8, 3
    D, H, W = 8, 16, 16
    activation = "relu"

    key = jax.random.PRNGKey(0)
    kx, kw, kb = jax.random.split(key, 3)
    x = jax.random.normal(kx, (N, Cin, D, H, W), dtype=jnp.float32)
    weight = 0.1 * jax.random.normal(kw, (Cout, Cin, K, K, K), dtype=jnp.float32)
    bias = 0.05 * jax.random.normal(kb, (Cout,), dtype=jnp.float32)

    ref = _reference_conv3d(x, weight, bias, activation=activation)

    # 1) Exact-semantics path (f32 operands): strict tolerance.
    out_f32 = conv_block_3d(x, weight, bias, activation=activation,
                            compute_dtype=jnp.float32)
    out_f32 = jax.block_until_ready(out_f32)
    assert out_f32.shape == (N, Cout, D, H, W)
    assert jnp.allclose(out_f32, ref, rtol=1e-4, atol=1e-4), "f32 mismatch vs reference"

    # 2) Performance configuration (bf16 MXU operands, f32 accumulation and
    #    epilogue) per the review; looser tolerance reflects bf16 operands.
    out_bf16 = conv_block_3d(x, weight, bias, activation=activation,
                             compute_dtype=jnp.bfloat16)
    out_bf16 = jax.block_until_ready(out_bf16)
    assert out_bf16.shape == (N, Cout, D, H, W)
    assert jnp.allclose(out_bf16, ref, rtol=5e-2, atol=5e-2), "bf16 mismatch vs reference"

    print("KERNEL_OK")
</pallas_src>

<mosaic_0001>
module attributes {stable_mosaic.version = 11 : i64} {
  func.func @conv3d_kernel(%arg0: i32, %arg1: i32, %arg2: memref<1x10x16x216xf32, #tpu.memory_space<vmem>>, %arg3: memref<3x216x128xf32, #tpu.memory_space<vmem>>, %arg4: memref<1x128xf32, #tpu.memory_space<vmem>>, %arg5: memref<1x8x16x128xf32, #tpu.memory_space<vmem>>) attributes {dimension_semantics = [#tpu.dimension_semantics<parallel>, #tpu.dimension_semantics<parallel>], iteration_bounds = array<i64: 2, 1>, scalar_prefetch = 0 : i64, scratch_operands = 0 : i64, tpu.core_type = #tpu.core_type<tc>, window_params = [{transform_indices = @transform_0, window_bounds = array<i64: 1, 10, 16, 216>}, {pipeline_mode = #tpu.pipeline_mode<synchronous>, transform_indices = @transform_1, window_bounds = array<i64: 3, 216, 128>}, {pipeline_mode = #tpu.pipeline_mode<synchronous>, transform_indices = @transform_2, window_bounds = array<i64: 1, 128>}, {transform_indices = @transform_3, window_bounds = array<i64: 1, 8, 16, 128>}]} {
    %c8_i32 = arith.constant 8 : i32
    %0 = arith.muli %arg1, %c8_i32 : i32
    %1 = tpu.assume_multiple %0, 8 : i32
    %cst = arith.constant 0.000000e+00 : f32
    %2 = vector.broadcast %cst : f32 to vector<128x128xf32>
    %c0_i32 = arith.constant 0 : i32
    %3 = arith.addi %1, %c0_i32 : i32
    %c0 = arith.constant 0 : index
    %4 = arith.index_cast %3 : i32 to index
    %c0_0 = arith.constant 0 : index
    %c0_1 = arith.constant 0 : index
    %5 = vector.load %arg2[%c0, %4, %c0_0, %c0_1] : memref<1x10x16x216xf32, #tpu.memory_space<vmem>>, vector<1x8x16x216xf32>
    %6 = vector.shape_cast %5 : vector<1x8x16x216xf32> to vector<8x16x216xf32>
    %7 = vector.shape_cast %6 : vector<8x16x216xf32> to vector<128x216xf32>
    %c0_2 = arith.constant 0 : index
    %c0_3 = arith.constant 0 : index
    %c0_4 = arith.constant 0 : index
    %8 = vector.load %arg3[%c0_2, %c0_3, %c0_4] : memref<3x216x128xf32, #tpu.memory_space<vmem>>, vector<1x216x128xf32>
    %9 = vector.shape_cast %8 : vector<1x216x128xf32> to vector<216x128xf32>
    %cst_5 = arith.constant dense<0.000000e+00> : vector<128x128xf32>
    %10 = tpu.matmul %7, %9, %cst_5 {dimension_numbers = #tpu.dot_dimension_numbers<[1], [0], [0], [1], [0, 0, 1, 1], [], []>} : vector<128x216xf32>, vector<216x128xf32>, vector<128x128xf32> -> vector<128x128xf32>
    %11 = arith.addf %2, %10 : vector<128x128xf32>
    %c1_i32 = arith.constant 1 : i32
    %12 = arith.addi %1, %c1_i32 : i32
    %c0_6 = arith.constant 0 : index
    %13 = arith.index_cast %12 : i32 to index
    %c0_7 = arith.constant 0 : index
    %c0_8 = arith.constant 0 : index
    %14 = vector.load %arg2[%c0_6, %13, %c0_7, %c0_8] : memref<1x10x16x216xf32, #tpu.memory_space<vmem>>, vector<1x8x16x216xf32>
    %15 = vector.shape_cast %14 : vector<1x8x16x216xf32> to vector<8x16x216xf32>
    %16 = vector.shape_cast %15 : vector<8x16x216xf32> to vector<128x216xf32>
    %c1 = arith.constant 1 : index
    %c0_9 = arith.constant 0 : index
    %c0_10 = arith.constant 0 : index
    %17 = vector.load %arg3[%c1, %c0_9, %c0_10] : memref<3x216x128xf32, #tpu.memory_space<vmem>>, vector<1x216x128xf32>
    %18 = vector.shape_cast %17 : vector<1x216x128xf32> to vector<216x128xf32>
    %cst_11 = arith.constant dense<0.000000e+00> : vector<128x128xf32>
    %19 = tpu.matmul %16, %18, %cst_11 {dimension_numbers = #tpu.dot_dimension_numbers<[1], [0], [0], [1], [0, 0, 1, 1], [], []>} : vector<128x216xf32>, vector<216x128xf32>, vector<128x128xf32> -> vector<128x128xf32>
    %20 = arith.addf %11, %19 : vector<128x128xf32>
    %c2_i32 = arith.constant 2 : i32
    %21 = arith.addi %1, %c2_i32 : i32
    %c0_12 = arith.constant 0 : index
    %22 = arith.index_cast %21 : i32 to index
    %c0_13 = arith.constant 0 : index
    %c0_14 = arith.constant 0 : index
    %23 = vector.load %arg2[%c0_12, %22, %c0_13, %c0_14] : memref<1x10x16x216xf32, #tpu.memory_space<vmem>>, vector<1x8x16x216xf32>
    %24 = vector.shape_cast %23 : vector<1x8x16x216xf32> to vector<8x16x216xf32>
    %25 = vector.shape_cast %24 : vector<8x16x216xf32> to vector<128x216xf32>
    %c2 = arith.constant 2 : index
    %c0_15 = arith.constant 0 : index
    %c0_16 = arith.constant 0 : index
    %26 = vector.load %arg3[%c2, %c0_15, %c0_16] : memref<3x216x128xf32, #tpu.memory_space<vmem>>, vector<1x216x128xf32>
    %27 = vector.shape_cast %26 : vector<1x216x128xf32> to vector<216x128xf32>
    %cst_17 = arith.constant dense<0.000000e+00> : vector<128x128xf32>
    %28 = tpu.matmul %25, %27, %cst_17 {dimension_numbers = #tpu.dot_dimension_numbers<[1], [0], [0], [1], [0, 0, 1, 1], [], []>} : vector<128x216xf32>, vector<216x128xf32>, vector<128x128xf32> -> vector<128x128xf32>
    %29 = arith.addf %20, %28 : vector<128x128xf32>
    %c0_18 = arith.constant 0 : index
    %c0_19 = arith.constant 0 : index
    %30 = vector.load %arg4[%c0_18, %c0_19] : memref<1x128xf32, #tpu.memory_space<vmem>>, vector<1x128xf32>
    %31 = vector.broadcast %30 : vector<1x128xf32> to vector<128x128xf32>
    %32 = arith.addf %29, %31 : vector<128x128xf32>
    %cst_20 = arith.constant 0.000000e+00 : f32
    %33 = vector.broadcast %cst_20 : f32 to vector<128x128xf32>
    %34 = arith.maximumf %32, %33 : vector<128x128xf32>
    %35 = vector.shape_cast %34 : vector<128x128xf32> to vector<1x8x16x128xf32>
    %c0_21 = arith.constant 0 : index
    %c0_22 = arith.constant 0 : index
    %c0_23 = arith.constant 0 : index
    %c0_24 = arith.constant 0 : index
    %36 = vector.load %arg5[%c0_21, %c0_22, %c0_23, %c0_24] : memref<1x8x16x128xf32, #tpu.memory_space<vmem>>, vector<1x8x16x128xf32>
    tpu.vector_store %arg5[%c0_21, %c0_22, %c0_23, %c0_24], %35 {strides = array<i32>} : memref<1x8x16x128xf32, #tpu.memory_space<vmem>>, vector<1x8x16x128xf32>,
    return
  }
  func.func @transform_0(%arg0: i32, %arg1: i32) -> (i32, i32, i32, i32) {
    %c0_i32 = arith.constant 0 : i32
    %c0_i32_0 = arith.constant 0 : i32
    %c0_i32_1 = arith.constant 0 : i32
    %c0_i32_2 = arith.constant 0 : i32
    return %arg0, %c0_i32, %c0_i32_0, %c0_i32_1 : i32, i32, i32, i32
  }
  func.func @transform_1(%arg0: i32, %arg1: i32) -> (i32, i32, i32) {
    %c0_i32 = arith.constant 0 : i32
    %c0_i32_0 = arith.constant 0 : i32
    %c0_i32_1 = arith.constant 0 : i32
    %c0_i32_2 = arith.constant 0 : i32
    return %c0_i32, %c0_i32_0, %c0_i32_1 : i32, i32, i32
  }
  func.func @transform_2(%arg0: i32, %arg1: i32) -> (i32, i32) {
    %c0_i32 = arith.constant 0 : i32
    %c0_i32_0 = arith.constant 0 : i32
    %c0_i32_1 = arith.constant 0 : i32
    return %c0_i32, %c0_i32_0 : i32, i32
  }
  func.func @transform_3(%arg0: i32, %arg1: i32) -> (i32, i32, i32, i32) {
    %c0_i32 = arith.constant 0 : i32
    %c0_i32_0 = arith.constant 0 : i32
    %c0_i32_1 = arith.constant 0 : i32
    return %arg0, %arg1, %c0_i32, %c0_i32_0 : i32, i32, i32, i32
  }
}

module attributes {stable_mosaic.version = 11 : i64} {
  func.func @conv3d_kernel(%arg0: i32, %arg1: i32, %arg2: memref<1x10x16x216xf32, #tpu.memory_space<vmem>>, %arg3: memref<3x216x128xf32, #tpu.memory_space<vmem>>, %arg4: memref<1x128xf32, #tpu.memory_space<vmem>>, %arg5: memref<1x8x16x128xf32, #tpu.memory_space<vmem>>) attributes {dimension_semantics = [#tpu.dimension_semantics<parallel>, #tpu.dimension_semantics<parallel>], iteration_bounds = array<i64: 2, 1>, scalar_prefetch = 0 : i64, scratch_operands = 0 : i64, tpu.core_type = #tpu.core_type<tc>, window_params = [{transform_indices = @transform_0, window_bounds = array<i64: 1, 10, 16, 216>}, {pipeline_mode = #tpu.pipeline_mode<synchronous>, transform_indices = @transform_1, window_bounds = array<i64: 3, 216, 128>}, {pipeline_mode = #tpu.pipeline_mode<synchronous>, transform_indices = @transform_2, window_bounds = array<i64: 1, 128>}, {transform_indices = @transform_3, window_bounds = array<i64: 1, 8, 16, 128>}]} {
    %c8_i32 = arith.constant 8 : i32
    %0 = arith.muli %arg1, %c8_i32 : i32
    %1 = tpu.assume_multiple %0, 8 : i32
    %cst = arith.constant 0.000000e+00 : f32
    %2 = vector.broadcast %cst : f32 to vector<128x128xf32>
    %c0_i32 = arith.constant 0 : i32
    %3 = arith.addi %1, %c0_i32 : i32
    %c0 = arith.constant 0 : index
    %4 = arith.index_cast %3 : i32 to index
    %c0_0 = arith.constant 0 : index
    %c0_1 = arith.constant 0 : index
    %5 = vector.load %arg2[%c0, %4, %c0_0, %c0_1] : memref<1x10x16x216xf32, #tpu.memory_space<vmem>>, vector<1x8x16x216xf32>
    %6 = vector.shape_cast %5 : vector<1x8x16x216xf32> to vector<8x16x216xf32>
    %7 = vector.shape_cast %6 : vector<8x16x216xf32> to vector<128x216xf32>
    %c0_2 = arith.constant 0 : index
    %c0_3 = arith.constant 0 : index
    %c0_4 = arith.constant 0 : index
    %8 = vector.load %arg3[%c0_2, %c0_3, %c0_4] : memref<3x216x128xf32, #tpu.memory_space<vmem>>, vector<1x216x128xf32>
    %9 = vector.shape_cast %8 : vector<1x216x128xf32> to vector<216x128xf32>
    %cst_5 = arith.constant dense<0.000000e+00> : vector<128x128xf32>
    %10 = tpu.matmul %7, %9, %cst_5 {dimension_numbers = #tpu.dot_dimension_numbers<[1], [0], [0], [1], [0, 0, 1, 1], [], []>} : vector<128x216xf32>, vector<216x128xf32>, vector<128x128xf32> -> vector<128x128xf32>
    %11 = arith.addf %2, %10 : vector<128x128xf32>
    %c1_i32 = arith.constant 1 : i32
    %12 = arith.addi %1, %c1_i32 : i32
    %c0_6 = arith.constant 0 : index
    %13 = arith.index_cast %12 : i32 to index
    %c0_7 = arith.constant 0 : index
    %c0_8 = arith.constant 0 : index
    %14 = vector.load %arg2[%c0_6, %13, %c0_7, %c0_8] : memref<1x10x16x216xf32, #tpu.memory_space<vmem>>, vector<1x8x16x216xf32>
    %15 = vector.shape_cast %14 : vector<1x8x16x216xf32> to vector<8x16x216xf32>
    %16 = vector.shape_cast %15 : vector<8x16x216xf32> to vector<128x216xf32>
    %c1 = arith.constant 1 : index
    %c0_9 = arith.constant 0 : index
    %c0_10 = arith.constant 0 : index
    %17 = vector.load %arg3[%c1, %c0_9, %c0_10] : memref<3x216x128xf32, #tpu.memory_space<vmem>>, vector<1x216x128xf32>
    %18 = vector.shape_cast %17 : vector<1x216x128xf32> to vector<216x128xf32>
    %cst_11 = arith.constant dense<0.000000e+00> : vector<128x128xf32>
    %19 = tpu.matmul %16, %18, %cst_11 {dimension_numbers = #tpu.dot_dimension_numbers<[1], [0], [0], [1], [0, 0, 1, 1], [], []>} : vector<128x216xf32>, vector<216x128xf32>, vector<128x128xf32> -> vector<128x128xf32>
    %20 = arith.addf %11, %19 : vector<128x128xf32>
    %c2_i32 = arith.constant 2 : i32
    %21 = arith.addi %1, %c2_i32 : i32
    %c0_12 = arith.constant 0 : index
    %22 = arith.index_cast %21 : i32 to index
    %c0_13 = arith.constant 0 : index
    %c0_14 = arith.constant 0 : index
    %23 = vector.load %arg2[%c0_12, %22, %c0_13, %c0_14] : memref<1x10x16x216xf32, #tpu.memory_space<vmem>>, vector<1x8x16x216xf32>
    %24 = vector.shape_cast %23 : vector<1x8x16x216xf32> to vector<8x16x216xf32>
    %25 = vector.shape_cast %24 : vector<8x16x216xf32> to vector<128x216xf32>
    %c2 = arith.constant 2 : index
    %c0_15 = arith.constant 0 : index
    %c0_16 = arith.constant 0 : index
    %26 = vector.load %arg3[%c2, %c0_15, %c0_16] : memref<3x216x128xf32, #tpu.memory_space<vmem>>, vector<1x216x128xf32>
    %27 = vector.shape_cast %26 : vector<1x216x128xf32> to vector<216x128xf32>
    %cst_17 = arith.constant dense<0.000000e+00> : vector<128x128xf32>
    %28 = tpu.matmul %25, %27, %cst_17 {dimension_numbers = #tpu.dot_dimension_numbers<[1], [0], [0], [1], [0, 0, 1, 1], [], []>} : vector<128x216xf32>, vector<216x128xf32>, vector<128x128xf32> -> vector<128x128xf32>
    %29 = arith.addf %20, %28 : vector<128x128xf32>
    %c0_18 = arith.constant 0 : index
    %c0_19 = arith.constant 0 : index
    %30 = vector.load %arg4[%c0_18, %c0_19] : memref<1x128xf32, #tpu.memory_space<vmem>>, vector<1x128xf32>
    %31 = vector.broadcast %30 : vector<1x128xf32> to vector<128x128xf32>
    %32 = arith.addf %29, %31 : vector<128x128xf32>
    %cst_20 = arith.constant 0.000000e+00 : f32
    %33 = vector.broadcast %cst_20 : f32 to vector<128x128xf32>
    %34 = arith.maximumf %32, %33 : vector<128x128xf32>
    %35 = vector.shape_cast %34 : vector<128x128xf32> to vector<1x8x16x128xf32>
    %c0_21 = arith.constant 0 : index
    %c0_22 = arith.constant 0 : index
    %c0_23 = arith.constant 0 : index
    %c0_24 = arith.constant 0 : index
    %36 = vector.load %arg5[%c0_21, %c0_22, %c0_23, %c0_24] : memref<1x8x16x128xf32, #tpu.memory_space<vmem>>, vector<1x8x16x128xf32>
    tpu.vector_store %arg5[%c0_21, %c0_22, %c0_23, %c0_24], %35 {strides = array<i32>} : memref<1x8x16x128xf32, #tpu.memory_space<vmem>>, vector<1x8x16x128xf32>,
    return
  }
  func.func @transform_0(%arg0: i32, %arg1: i32) -> (i32, i32, i32, i32) {
    %c0_i32 = arith.constant 0 : i32
    %c0_i32_0 = arith.constant 0 : i32
    %c0_i32_1 = arith.constant 0 : i32
    %c0_i32_2 = arith.constant 0 : i32
    return %arg0, %c0_i32, %c0_i32_0, %c0_i32_1 : i32, i32, i32, i32
  }
  func.func @transform_1(%arg0: i32, %arg1: i32) -> (i32, i32, i32) {
    %c0_i32 = arith.constant 0 : i32
    %c0_i32_0 = arith.constant 0 : i32
    %c0_i32_1 = arith.constant 0 : i32
    %c0_i32_2 = arith.constant 0 : i32
    return %c0_i32, %c0_i32_0, %c0_i32_1 : i32, i32, i32
  }
  func.func @transform_2(%arg0: i32, %arg1: i32) -> (i32, i32) {
    %c0_i32 = arith.constant 0 : i32
    %c0_i32_0 = arith.constant 0 : i32
    %c0_i32_1 = arith.constant 0 : i32
    return %c0_i32, %c0_i32_0 : i32, i32
  }
  func.func @transform_3(%arg0: i32, %arg1: i32) -> (i32, i32, i32, i32) {
    %c0_i32 = arith.constant 0 : i32
    %c0_i32_0 = arith.constant 0 : i32
    %c0_i32_1 = arith.constant 0 : i32
    return %arg0, %arg1, %c0_i32, %c0_i32_0 : i32, i32, i32, i32
  }
}

</mosaic_0001>

<bundles_post_ra>
// kernel: tpu_custom_call.1
= control target key start
LH: loop header
LB: loop body
LE: loop exit
PB: predicated region body
PF: predicated region fallthrough
CT: control target
= control target key end

     0   :  { %8 = vsyncpa [#allocation3], 0  ;;  %s2254_s0 = inlined_call_operand.hbm [shape: f32[2,10,16,216], index: 0, kind: input, shape index: {}]   ;;  %s2255_s1 = inlined_call_operand.hbm [shape: f32[3,216,128], index: 1, kind: input, shape index: {}]   ;;  %s2256_s2 = inlined_call_operand.vmem [shape: f32[1,128], index: 2, kind: input, shape index: {}]   ;;  %s2257_s3 = inlined_call_operand.hbm [shape: f32[2,8,16,128], index: 3, kind: output, shape index: {}]  }
   0x1   :  { %10 = vsyncpa [#allocation3 + $0x1], 0 }
   0x2   :  { %11 = vsyncpa [#allocation6], 0 }
   0x3   :  { %12 = vsyncpa [#allocation4], 0 }
   0x4   :  { %14 = vsyncpa [#allocation4 + $0x1], 0  ;;  %s1716_s12 = smov 0   ;;  %s1718_s13 = smov 0  }
   0x5   :  { %s1720_s14 = smov 0   ;;  %s1722_s15 = smov 0  }
   0x6   :  { %s1724_s16 = smov 0   ;;  %s1726_s17 = smov 0  }
   0x7 LB: > { %s1182_s18 = sadd.s32 4294967295, %s1683_s17   ;;  %s1183_s19 = sadd.s32 4294967294, %s1683_s17   ;;  %s1683_s17 = sphi %s1726_s17, %s20_s17   ;;  %s1679_s16 = sphi %s1724_s16, %s2280_s16   ;;  %s1675_s15 = sphi %s1722_s15, %s2279_s15   ;;  %s1671_s14 = sphi %s1720_s14, %s2278_s14   ;;  %s1667_s13 = sphi %s1718_s13, %s2277_s13   ;;  %s1663_s12 = sphi %s1716_s12, %s2276_s12  }
   0x8   : > { %p52_p0 = scmp.ne.s32.totalorder %s1667_s13, %s1663_s12  ;;  %p1750_p1 = scmp.eq.s32.totalorder %s1182_s18, 0 }
   0x9   : > { %p1754_p2 = scmp.eq.s32.totalorder %s1182_s18, 1  ;;  %p126_p3 = scmp.eq.s32.totalorder %s1183_s19, 1 }
   0xa   : > { %s2262_s20 = scalar_select %p1750_p1, 1, 0 }
   0xb   : > { %s2263_s21 = scalar_select %p1754_p2, 1, 0 }
   0xc   : > { %p1760_p4 = por %p1750_p1, %p52_p0  ;;  %p1184_p5 = scmp.ge.s32.totalorder %s1683_s17, 1 }
   0xd   : > { %p1765_p6 = por %p126_p3, %p52_p0  ;;  %p133_p7 = scmp.lt.s32.totalorder %s1683_s17, 3 }
   0xe   : > { %s2264_s22 = scalar_select %p1760_p4, 1, 0 }
   0xf   : > { %s2265_s23 = scalar_select %p1765_p6, 1, 0 }
  0x10   : > { %p1770_p8 = pnand %p1184_p5, %p133_p7  ;;  %s1685_s25 = smov [#allocation5]  }
  0x11   : > { %s145_s26 = sshll.u32 %s1685_s25, 4  ;;  %s32_s28 = sadd.s32 1, %s1679_s16  ;;  %s146_s26 = int_to_ptr.vmem [resolvable:$true] %s145_s26 }
  0x12   : > { %s2266_s24 = scalar_select %p1770_p8, 1, 0 }
  0x13   : > { %p1466_p9 = pneg %p1770_p8  ;;  %s1539_s4 = scalar_lea.hbm %s2255_s1, 10368 }
  0x14   : > { %p1540_p12 = scmp.ne.s32.totalorder %s2255_s1, %s1539_s4  ;;  %p1546_p5 = scmp.lt.u32.totalorder %s1539_s4, %s2255_s1 }
  0x15   : > { %p1779_p11 = pnand %p1466_p9, %p1750_p1 }
  0x17   : > { %p1541_p13 = pneg %p1779_p11 }
  0x19   : > { %p1542_p0 = pnand %p1541_p13, %p1540_p12 }
  0x1b   : > { %p1543_p3 = pneg %p1542_p0 }
  0x1d   : > { %p1548_p7 = pnand %p1546_p5, %p1543_p3 }
  0x1f   : > { %1551 = shalt.err (!%p1548_p7)
}
  0x20   : > { %s1552_s9 = scalar_lea.vmem %s146_s26, 10368  ;;  %p1560_p1 = scmp.lt.s32.totalorder %s146_s26, %s146_s26 }
  0x21   : > { %p1553_p9 = scmp.ne.s32.totalorder %s146_s26, %s1552_s9  ;;  %p1561_p4 = scmp.lt.s32.totalorder %s1552_s9, %s1552_s9 }
  0x23   : > { %p1555_p10 = pnand %p1553_p9, %p1541_p13  ;;  %p1562_p8 = por %p1561_p4, %p1560_p1 }
  0x25   : > { %p1556_p6 = pneg %p1555_p10 }
  0x27   : > { %p1563_p2 = pnand %p1562_p8, %p1556_p6 }
  0x29   : > { %1566 = shalt.err (!%p1563_p2)
}
  0x2a   : > { %s1686_s10 = smov 128   ;;  %s1687_s11 = smov 8  }
  0x2b   : > { %1469 = dma.hbm_to_vmem [thread:$0]  (!%p1779_p11), %s2255_s1, 10368, %s146_s26, [#allocation6], %s1686_s10, %s1686_s10, %s1687_s11  }
  0x2c   : > { %p34_p1 = scmp.ge.s32.totalorder %s32_s28, 2  ;;  %s39_s25 = sadd.s32 1, %s1671_s14 }
  0x2d   : > { %p46_p2 = scmp.ne.s32.totalorder %s1671_s14, %s1667_s13  ;;  %p47_p4 = scmp.eq.s32.totalorder %s1683_s17, 0 }
  0x2e   : > { %s2282_s28 = smov (%p34_p1, %s32_s28), 0  ;;  %p2268_p8 = scmp.ne.s32.totalorder %s2263_s21, 0 }
  0x2f   : > { %p48_p6 = por %p47_p4, %p46_p2  ;;  %s36_s30 = ssub.s32 %s1679_s16, %s2282_s28 }
  0x30   : > { %p1808_p10 = por %p2268_p8, %p46_p2  ;;  %p1479_p12 = scmp.lt.s32.totalorder %s1683_s17, 2 }
  0x31   : > { %p37_p13 = scmp.eq.s32.totalorder %s36_s30, 0  ;;  %s162_s27 = sand.u32 1, %s1671_s14  }
  0x32   : > { %s1455_s4 = smul.u32 320, %s162_s27  ;;  %p1820_p11 = pnand %p1479_p12, %p48_p6 }
  0x33   : > { %s1817_s5 = scalar_select %p37_p13, %s1671_s14, %s39_s25  }
  0x34   : > { %s1456_s26 = smul.u32 5120, %s1679_s16  ;;  %s166_s6 = scalar_lea.vmem [#allocation2], %s1455_s4 }
  0x35   : > { %s173_s7 = sshll.u32 %s166_s6, 4  ;;  %s1831_s11 = scalar_lea.sflag [#allocation3], %s162_s27  ;;  %s1829_s7 = int_to_ptr.vmem [resolvable:$true] %s173_s7 }
  0x36   : > { %s1827_s10 = scalar_lea.hbm %s2254_s0, %s1456_s26  ;;  %p1569_p3 = pneg %p1820_p11 }
  0x37   : > { %s1567_s18 = scalar_lea.hbm %s1827_s10, 5120  ;;  %s1572_s30 = scalar_lea.hbm %s2254_s0, 10240 }
  0x38   : > { %p1568_p0 = scmp.ne.s32.totalorder %s1827_s10, %s1567_s18  ;;  %p1573_p9 = scmp.lt.u32.totalorder %s1827_s10, %s2254_s0 }
  0x39   : > { %p1574_p1 = scmp.lt.u32.totalorder %s1572_s30, %s1567_s18  ;;  %p1576_p4 = scmp.lt.u32.totalorder %s1567_s18, %s1827_s10 }
  0x3a   : > { %p1570_p5 = pnand %p1569_p3, %p1568_p0 }
  0x3b   : > { %p1575_p2 = por %p1574_p1, %p1573_p9 }
  0x3c   : > { %p1571_p7 = pneg %p1570_p5 }
  0x3d   : > { %p1577_p6 = por %p1576_p4, %p1575_p2 }
  0x3f   : > { %p1578_p8 = pnand %p1577_p6, %p1571_p7 }
  0x41   : > { %1581 = shalt.err (!%p1578_p8)
}
  0x42   : > { %s1582_s27 = scalar_lea.vmem %s1829_s7, 5120  ;;  %s1688_s6 = smov [#allocation2]  }
  0x43   : > { %p1583_p12 = scmp.ne.s32.totalorder %s1829_s7, %s1582_s27  ;;  %s1587_s9 = sshll.u32 %s1688_s6, 4  ;;  %s1588_s9 = int_to_ptr.vmem [resolvable:$false] %s1587_s9 }
  0x44   : > { %s1589_s21 = scalar_lea.vmem %s1588_s9, 10240  ;;  %p1590_p5 = scmp.lt.s32.totalorder %s1829_s7, %s1588_s9 }
  0x45   : > { %p1585_p13 = pnand %p1583_p12, %p1569_p3  ;;  %p1591_p9 = scmp.lt.s32.totalorder %s1589_s21, %s1582_s27 }
  0x47   : > { %p1586_p0 = pneg %p1585_p13  ;;  %p1592_p1 = por %p1591_p9, %p1590_p5 }
  0x49   : > { %p1593_p2 = pnand %p1592_p1, %p1586_p0 }
  0x4b   : > { %1596 = shalt.err (!%p1593_p2)
}
  0x4c   : > { %s1689_s18 = smov 256   ;;  %s1690_s19 = smov 16  }
  0x4d   : > { %1473 = dma.hbm_to_vmem [thread:$0]  (!%p1820_p11), %s1827_s10, 5120, %s1829_s7, %s1831_s11, %s1689_s18, %s1689_s18, %s1690_s19  }
  0x4e   : > { %p2271_p3 = scmp.ne.s32.totalorder %s2266_s24, 0 }
  0x4f   : > { %s1862_s25 = sand.u32 (!%p2271_p3), 1, %s1667_s13   ;;  %p2272_p7 = scmp.ne.s32.totalorder (!%p2271_p3), %s2264_s22, 0 }
  0x50   : > { %185 = sbr.rel (%p2271_p3) target bundleno = 473 (0x1d9), region = 32  ;;  %s188_s4 = scalar_lea.sflag (!%p2271_p3), [#allocation3], %s1862_s25 }
  0x51   : > { %s1457_s30 = smul.u32 (!%p2271_p3), 320, %s1862_s25 }
  0x53   : > { %s1866_s26 = scalar_lea.vmem (!%p2271_p3), [#allocation2], %s1457_s30 }
  0x57   : > { %1650 = dma.done.wait (%p2272_p7), %s188_s4, 5120  }
  0x58   : > { %1652 = vsyncadd (%p2272_p7), %s188_s4, 4294962176  ;;  %p2273_p11 = scmp.ne.s32.totalorder %s2262_s20, 0 }
  0x5a   : > { %1654 = dma.done.wait (%p2273_p11), [#allocation6], 10368  }
  0x5b   : > { %1656 = vsyncadd (%p2273_p11), [#allocation6], 4294956928  ;;  %v1691_v0 = vmov 0.0|0.0   ;;  %v319_v1 = vld [vmem:[#allocation5 + $0xd8] sm:$0xff]  ;;  %v320_v2 = vld [vmem:[#allocation5 + $0xe0] sm:$0xff]  ;;  %vm346_vm0 = vcmask 719872  }
  0x5c   : > { %1310 = vmatprep.subr.bf16.mxu0 %v1691_v0  ;;  %1349 = vmatprep.subr.bf16.mxu1 %v1691_v0  ;;  %v255_v3 = vld [vmem:[#allocation5] sm:$0xff]  ;;  %v1311_v4 = vpack.c.bf16 %v320_v2, %v319_v1  ;;  %v256_v5 = vld [vmem:[#allocation5 + $0x8] sm:$0xff]  ;;  %v322_v7 = vld [vmem:[#allocation5 + $0xf0] sm:$0xff]  ;;  %s1190_s24 = sshll.u32 %s1862_s25, 7  ;;  %s1309_s8 = sshll.u32 %s1675_s15, 11 }
  0x5d   : > { %v321_v6 = vld [vmem:[#allocation5 + $0xe8] sm:$0xff]  ;;  %v1350_v8 = vpack.c.bf16 %v256_v5, %v255_v3  ;;  %v257_v9 = vld [vmem:[#allocation5 + $0x10] sm:$0xff]  ;;  %v258_v10 = vld [vmem:[#allocation5 + $0x18] sm:$0xff]  ;;  %s2155_s7 = scalar_lea.vmem [#allocation7], %s1190_s24  ;;  %s2201_s6 = scalar_lea.hbm %s2257_s3, %s1309_s8 }
  0x5e   : > { %1312 = vmatpush1.bf16.msra.mxu0 %v1311_v4  ;;  %v1314_v11 = vpack.c.bf16 %v322_v7, %v321_v6  ;;  %v1353_v12 = vpack.c.bf16 %v258_v10, %v257_v9  ;;  %v323_v13 = vld [vmem:[#allocation5 + $0xf8] sm:$0xff]  ;;  %v324_v14 = vld [vmem:[#allocation5 + $0x100] sm:$0xff]  ;;  %v260_v16 = vld [vmem:[#allocation5 + $0x28] sm:$0xff]  ;;  %s1078_s10 = sshll.u32 %s2155_s7, 4  ;;  %s1062_s15 = scalar_lea.sflag [#allocation4], %s1862_s25  ;;  %s2203_s10 = int_to_ptr.vmem [resolvable:$true] %s1078_s10 }
  0x5f   : > { %1351 = vmatpush1.bf16.msra.mxu1 %v1350_v8  ;;  %1313 = vmatprep.subr.bf16.mxu0 %v1691_v0  ;;  %v259_v15 = vld [vmem:[#allocation5 + $0x20] sm:$0xff]  ;;  %v1317_v17 = vpack.c.bf16 %v324_v14, %v323_v13  ;;  %v325_v19 = vld [vmem:[#allocation5 + $0x108] sm:$0xff]  ;;  %v326_v20 = vld [vmem:[#allocation5 + $0x110] sm:$0xff]  ;;  %s1597_s9 = scalar_lea.vmem %s2203_s10, 2048  ;;  %s1693_s21 = smov [#allocation7]  }
  0x60   : > { %1352 = vmatprep.subr.bf16.mxu1 %v1691_v0  ;;  %v1356_v18 = vpack.c.bf16 %v260_v16, %v259_v15  ;;  %v261_v21 = vld [vmem:[#allocation5 + $0x30] sm:$0xff]  ;;  %v262_v22 = vld [vmem:[#allocation5 + $0x38] sm:$0xff]  ;;  %v1320_v23 = vpack.c.bf16 %v326_v20, %v325_v19  ;;  %v328_v26 = vld [vmem:[#allocation5 + $0x120] sm:$0xff]  ;;  %v1692_v20 = vmov 0.0   ;;  %p1598_p4 = scmp.ne.s32.totalorder %s2203_s10, %s1597_s9  ;;  %s1601_s18 = sshll.u32 %s1693_s21, 4  ;;  %s1602_s18 = int_to_ptr.vmem [resolvable:$false] %s1601_s18 }
  0x61   : > { %v1359_v24 = vpack.c.bf16 %v262_v22, %v261_v21  ;;  %v327_v25 = vld [vmem:[#allocation5 + $0x118] sm:$0xff]  ;;  %v263_v27 = vld [vmem:[#allocation5 + $0x40] sm:$0xff]  ;;  %v264_v28 = vld [vmem:[#allocation5 + $0x48] sm:$0xff]  ;;  %s1603_s19 = scalar_lea.vmem %s1602_s18, 4096  ;;  %p1604_p12 = scmp.lt.s32.totalorder %s2203_s10, %s1602_s18 }
  0x62   : > { %1315 = vmatpush1.bf16.msra.mxu0 %v1314_v11  ;;  %v1323_v29 = vpack.c.bf16 %v328_v26, %v327_v25  ;;  %v1362_v30 = vpack.c.bf16 %v264_v28, %v263_v27  ;;  %v329_v31 = vld [vmem:[#allocation5 + $0x128] sm:$0xff]  ;;  %v330_v32 = vld [vmem:[#allocation5 + $0x130] sm:$0xff]  ;;  %v266_v34 = vld [vmem:[#allocation5 + $0x58] sm:$0xff]  ;;  %p1599_p6 = pnand %p1598_p4, %p1808_p10  ;;  %p1605_p13 = scmp.lt.s32.totalorder %s1603_s19, %s1597_s9 }
  0x63   : > { %1354 = vmatpush1.bf16.msra.mxu1 %v1353_v12  ;;  %1316 = vmatprep.subr.bf16.mxu0 %v1691_v0  ;;  %v265_v33 = vld [vmem:[#allocation5 + $0x50] sm:$0xff]  ;;  %v1887_v35 = vld [vmem:[%s1866_s26 + $0x28] sm:$0xff]  ;;  %v1326_v37 = vpack.c.bf16 %v330_v32, %v329_v31  ;;  %v331_v39 = vld [vmem:[#allocation5 + $0x138] sm:$0xff] }
  0x64   : > { %1355 = vmatprep.subr.bf16.mxu1 %v1691_v0  ;;  %1223 = vmatprep.mubr.msk.f32.mxu0 %vm346_vm0, %v1887_v35  ;;  %v224_v36 = vld [vmem:[%s1866_s26 + $0x8] sm:$0xff]  ;;  %v1365_v38 = vpack.c.bf16 %v266_v34, %v265_v33  ;;  %v332_v40 = vld [vmem:[#allocation5 + $0x140] sm:$0xff]  ;;  %v334_v46 = vld [vmem:[#allocation5 + $0x150] sm:$0xff]  ;;  %p1600_p8 = pneg %p1599_p6  ;;  %p1606_p0 = por %p1605_p13, %p1604_p12 }
  0x65   : > { %1239 = vmatprep.mubr.msk.f32.mxu1 %vm346_vm0, %v224_v36  ;;  %v267_v41 = vld [vmem:[#allocation5 + $0x60] sm:$0xff]  ;;  %v268_v42 = vld [vmem:[#allocation5 + $0x68] sm:$0xff]  ;;  %v1329_v43 = vpack.c.bf16 %v332_v40, %v331_v39  ;;  %v269_v47 = vld [vmem:[#allocation5 + $0x70] sm:$0xff] }
  0x66   : > { %1318 = vmatpush1.bf16.msra.mxu0 %v1317_v17  ;;  %v1368_v44 = vpack.c.bf16 %v268_v42, %v267_v41  ;;  %v333_v45 = vld [vmem:[#allocation5 + $0x148] sm:$0xff]  ;;  %v270_v48 = vld [vmem:[#allocation5 + $0x78] sm:$0xff]  ;;  %v336_v52 = vld [vmem:[#allocation5 + $0x160] sm:$0xff]  ;;  %p1607_p5 = pnand %p1606_p0, %p1600_p8 }
  0x67   : > { %1357 = vmatpush1.bf16.msra.mxu1 %v1356_v18  ;;  %1319 = vmatprep.subr.bf16.mxu0 %v1691_v0  ;;  %v1332_v49 = vpack.c.bf16 %v334_v46, %v333_v45  ;;  %v1371_v50 = vpack.c.bf16 %v270_v48, %v269_v47  ;;  %v335_v51 = vld [vmem:[#allocation5 + $0x158] sm:$0xff]  ;;  %v271_v53 = vld [vmem:[#allocation5 + $0x80] sm:$0xff]  ;;  %v272_v54 = vld [vmem:[#allocation5 + $0x88] sm:$0xff] }
  0x68   : > { %1358 = vmatprep.subr.bf16.mxu1 %v1691_v0  ;;  %v1335_v55 = vpack.c.bf16 %v336_v52, %v335_v51  ;;  %v1374_v56 = vpack.c.bf16 %v272_v54, %v271_v53  ;;  %v337_v57 = vld [vmem:[#allocation5 + $0x168] sm:$0xff]  ;;  %v338_v58 = vld [vmem:[#allocation5 + $0x170] sm:$0xff]  ;;  %v274_v60 = vld [vmem:[#allocation5 + $0x98] sm:$0xff] }
  0x69   : > { %v273_v59 = vld [vmem:[#allocation5 + $0x90] sm:$0xff]  ;;  %v1338_v61 = vpack.c.bf16 %v338_v58, %v337_v57  ;;  %v339_v63 = vld [vmem:[#allocation5 + $0x178] sm:$0xff]  ;;  %v340_v1 = vld [vmem:[#allocation5 + $0x180] sm:$0xff] }
  0x6a   : > { %1321 = vmatpush1.bf16.msra.mxu0 %v1320_v23  ;;  %v1377_v62 = vpack.c.bf16 %v274_v60, %v273_v59  ;;  %v275_v2 = vld [vmem:[#allocation5 + $0xa0] sm:$0xff]  ;;  %v276_v3 = vld [vmem:[#allocation5 + $0xa8] sm:$0xff]  ;;  %v1341_v4 = vpack.c.bf16 %v340_v1, %v339_v63  ;;  %v342_v7 = vld [vmem:[#allocation5 + $0x190] sm:$0xff] }
  0x6b   : > { %1360 = vmatpush1.bf16.msra.mxu1 %v1359_v24  ;;  %1322 = vmatprep.subr.bf16.mxu0 %v1691_v0  ;;  %v1380_v5 = vpack.c.bf16 %v276_v3, %v275_v2  ;;  %v341_v6 = vld [vmem:[#allocation5 + $0x188] sm:$0xff]  ;;  %v277_v8 = vld [vmem:[#allocation5 + $0xb0] sm:$0xff]  ;;  %v278_v9 = vld [vmem:[#allocation5 + $0xb8] sm:$0xff] }
  0x6c   : > { %1361 = vmatprep.subr.bf16.mxu1 %v1691_v0  ;;  %v1344_v10 = vpack.c.bf16 %v342_v7, %v341_v6  ;;  %v1383_v11 = vpack.c.bf16 %v278_v9, %v277_v8  ;;  %v343_v12 = vld [vmem:[#allocation5 + $0x198] sm:$0xff]  ;;  %v344_v13 = vld [vmem:[#allocation5 + $0x1a0] sm:$0xff]  ;;  %v280_v15 = vld [vmem:[#allocation5 + $0xc8] sm:$0xff] }
  0x6d   : > { %v279_v14 = vld [vmem:[#allocation5 + $0xc0] sm:$0xff]  ;;  %v1347_v16 = vpack.c.bf16 %v344_v13, %v343_v12  ;;  %v770_v18 = vld [vmem:[#allocation5 + $0x1b0] sm:$0xff]  ;;  %v771_v19 = vld [vmem:[#allocation5 + $0x1b8] sm:$0xff] }
  0x6e   : > { %1324 = vmatpush1.bf16.msra.mxu0 %v1323_v29  ;;  %v1386_v17 = vpack.c.bf16 %v280_v15, %v279_v14  ;;  %v345_v21 = vld [vmem:[#allocation5 + $0x1a8] sm:$0xff]  ;;  %v281_v22 = vld [vmem:[#allocation5 + $0xd0] sm:$0xff]  ;;  %v1191_v23 = vld [vmem:[%s1866_s26 + $0x20] sm:$0xff]  ;;  %v1389_v25 = vpack.c.bf16 %v771_v19, %v770_v18 }
  0x6f   : > { %1363 = vmatpush1.bf16.msra.mxu1 %v1362_v30  ;;  %1325 = vmatprep.subr.bf16.mxu0 %v1691_v0  ;;  %v223_v24 = vld [vmem:[%s1866_s26] sm:$0xff]  ;;  %v773_v27 = vld [vmem:[#allocation5 + $0x1c8] sm:$0xff]  ;;  %v1194_v28 = vld [vmem:[%s1866_s26 + $0x38] sm:$0xff] }
  0x70   : > { %1364 = vmatprep.subr.bf16.mxu1 %v1691_v0  ;;  %v772_v26 = vld [vmem:[#allocation5 + $0x1c0] sm:$0xff]  ;;  %v226_v29 = vld [vmem:[%s1866_s26 + $0x18] sm:$0xff]  ;;  %v1193_v30 = vld [vmem:[%s1866_s26 + $0x30] sm:$0xff] }
  0x71   : > { %v225_v31 = vld [vmem:[%s1866_s26 + $0x10] sm:$0xff]  ;;  %v1392_v32 = vpack.c.bf16 %v773_v27, %v772_v26  ;;  %v1922_v33 = vld [vmem:[%s1866_s26 + $0x48] sm:$0xff]  ;;  %v775_v36 = vld [vmem:[#allocation5 + $0x1d8] sm:$0xff] }
  0x72   : > { %1327 = vmatpush1.bf16.msra.mxu0 %v1326_v37  ;;  %v774_v34 = vld [vmem:[#allocation5 + $0x1d0] sm:$0xff]  ;;  %v1926_v37 = vld [vmem:[%s1866_s26 + $0x40] sm:$0xff]  ;;  %v777_v41 = vld [vmem:[#allocation5 + $0x1e8] sm:$0xff] }
  0x73   : > { %1366 = vmatpush1.bf16.msra.mxu1 %v1365_v38  ;;  %1328 = vmatprep.subr.bf16.mxu0 %v1691_v0  ;;  %v1932_v38 = vld [vmem:[%s1866_s26 + $0x58] sm:$0xff]  ;;  %v1395_v39 = vpack.c.bf16 %v775_v36, %v774_v34  ;;  %v776_v40 = vld [vmem:[#allocation5 + $0x1e0] sm:$0xff]  ;;  %v1939_v42 = vld [vmem:[%s1866_s26 + $0x50] sm:$0xff] }
  0x74   : > { %1367 = vmatprep.subr.bf16.mxu1 %v1691_v0  ;;  %v779_v45 = vld [vmem:[#allocation5 + $0x1f8] sm:$0xff]  ;;  %v1951_v46 = vld [vmem:[%s1866_s26 + $0x60] sm:$0xff]  ;;  %v1966_v51 = vld [vmem:[%s1866_s26 + $0x70] sm:$0xff] }
  0x75   : > { %v1957_v47 = vld [vmem:[%s1866_s26 + $0x78] sm:$0xff]  ;;  %v1972_v52 = vld [vmem:[%s1866_s26 + $0x88] sm:$0xff]  ;;  %v782_v54 = vld [vmem:[#allocation5 + $0x210] sm:$0xff] }
  0x76   : > { %1330 = vmatpush1.bf16.msra.mxu0 %v1329_v43  ;;  %v1398_v43 = vpack.c.bf16 %v777_v41, %v776_v40  ;;  %v1986_v57 = vld [vmem:[%s1866_s26 + $0x98] sm:$0xff]  ;;  %v784_v59 = vld [vmem:[#allocation5 + $0x220] sm:$0xff]  ;;  %v785_v60 = vld [vmem:[#allocation5 + $0x228] sm:$0xff] }
  0x77   : > { %1369 = vmatpush1.bf16.msra.mxu1 %v1368_v44  ;;  %1331 = vmatprep.subr.bf16.mxu0 %v1691_v0  ;;  %v778_v44 = vld [vmem:[#allocation5 + $0x1f0] sm:$0xff]  ;;  %v1410_v63 = vpack.c.bf16 %v785_v60, %v784_v59  ;;  %v787_v2 = vld [vmem:[#allocation5 + $0x238] sm:$0xff]  ;;  %v2008_v3 = vld [vmem:[%s1866_s26 + $0xa0] sm:$0xff] }
  0x78   : > { %1370 = vmatprep.subr.bf16.mxu1 %v1691_v0  ;;  %v1401_v48 = vpack.c.bf16 %v779_v45, %v778_v44  ;;  %v786_v1 = vld [vmem:[#allocation5 + $0x230] sm:$0xff]  ;;  %v788_v6 = vld [vmem:[#allocation5 + $0x240] sm:$0xff]  ;;  %v789_v7 = vld [vmem:[#allocation5 + $0x248] sm:$0xff] }
  0x79   : > { %v2022_v8 = vld [vmem:[%s1866_s26 + $0xb0] sm:$0xff]  ;;  %v2028_v9 = vld [vmem:[%s1866_s26 + $0xc8] sm:$0xff]  ;;  %v791_v12 = vld [vmem:[#allocation5 + $0x258] sm:$0xff] }
  0x7a   : > { %1333 = vmatpush1.bf16.msra.mxu0 %v1332_v49  ;;  %v780_v49 = vld [vmem:[#allocation5 + $0x200] sm:$0xff]  ;;  %v2042_v14 = vld [vmem:[%s1866_s26 + $0xd8] sm:$0xff]  ;;  %v1213_v18 = vld [vmem:[%s1866_s26 + $0xd0] sm:$0xff] }
  0x7b   : > { %1372 = vmatpush1.bf16.msra.mxu1 %v1371_v50  ;;  %1334 = vmatprep.subr.bf16.mxu0 %v1691_v0  ;;  %v781_v50 = vld [vmem:[#allocation5 + $0x208] sm:$0xff]  ;;  %v2036_v13 = vld [vmem:[%s1866_s26 + $0xc0] sm:$0xff]  ;;  %v1217_v27 = vld [vmem:[%s1866_s26 + $0xf0] sm:$0xff] }
  0x7c   : > { %1373 = vmatprep.subr.bf16.mxu1 %v1691_v0  ;;  %v1404_v53 = vpack.c.bf16 %v781_v50, %v780_v49  ;;  %v1216_v19 = vld [vmem:[%s1866_s26 + $0xe8] sm:$0xff]  ;;  %v1285_v34 = vld [vmem:[%s1866_s26 + $0x130] sm:$0xff] }
  0x7e   : > { %1336 = vmatpush1.bf16.msra.mxu0 %v1335_v55  ;;  %v783_v55 = vld [vmem:[#allocation5 + $0x218] sm:$0xff] }
  0x7f   : > { %1375 = vmatpush1.bf16.msra.mxu1 %v1374_v56  ;;  %1337 = vmatprep.subr.bf16.mxu0 %v1691_v0  ;;  %v1980_v56 = vld [vmem:[%s1866_s26 + $0x80] sm:$0xff]  ;;  %v1407_v58 = vpack.c.bf16 %v783_v55, %v782_v54 }
  0x80   : > { %1376 = vmatprep.subr.bf16.mxu1 %v1691_v0 }
  0x82   : > { %1339 = vmatpush1.bf16.msra.mxu0 %v1338_v61  ;;  %v1994_v61 = vld [vmem:[%s1866_s26 + $0x90] sm:$0xff] }
  0x83   : > { %1378 = vmatpush1.bf16.msra.mxu1 %v1377_v62  ;;  %1340 = vmatprep.subr.bf16.mxu0 %v1691_v0  ;;  %v2000_v62 = vld [vmem:[%s1866_s26 + $0xa8] sm:$0xff] }
  0x84   : > { %1379 = vmatprep.subr.bf16.mxu1 %v1691_v0 }
  0x86   : > { %1342 = vmatpush1.bf16.msra.mxu0 %v1341_v4  ;;  %v2014_v4 = vld [vmem:[%s1866_s26 + $0xb8] sm:$0xff] }
  0x87   : > { %1381 = vmatpush1.bf16.msra.mxu1 %v1380_v5  ;;  %1343 = vmatprep.subr.bf16.mxu0 %v1691_v0  ;;  %v1413_v5 = vpack.c.bf16 %v787_v2, %v786_v1 }
  0x88   : > { %1382 = vmatprep.subr.bf16.mxu1 %v1691_v0 }
  0x8a   : > { %1345 = vmatpush1.bf16.msra.mxu0 %v1344_v10  ;;  %v1416_v10 = vpack.c.bf16 %v789_v7, %v788_v6 }
  0x8b   : > { %1384 = vmatpush1.bf16.msra.mxu1 %v1383_v11  ;;  %1346 = vmatprep.subr.bf16.mxu0 %v1691_v0  ;;  %v790_v11 = vld [vmem:[#allocation5 + $0x250] sm:$0xff] }
  0x8c   : > { %1385 = vmatprep.subr.bf16.mxu1 %v1691_v0  ;;  %v1419_v15 = vpack.c.bf16 %v791_v12, %v790_v11 }
  0x8e   : > { %1348 = vmatpush1.bf16.msra.mxu0 %v1347_v16  ;;  %v792_v16 = vld [vmem:[#allocation5 + $0x260] sm:$0xff] }
  0x8f   : > { %1387 = vmatpush1.bf16.msra.mxu1 %v1386_v17  ;;  %447 = vmatprep.subr.mxu0 %v1692_v20  ;;  %v793_v17 = vld [vmem:[#allocation5 + $0x268] sm:$0xff] }
  0x90   : > { %640 = vmatprep.subr.mxu1 %v1692_v20 }
  0x92   : > { %448 = vmatpush1.msra.mxu0 %v345_v21  ;;  %v1422_v21 = vpack.c.bf16 %v793_v17, %v792_v16 }
  0x93   : > { %641 = vmatpush1.msra.mxu1 %v281_v22  ;;  %460 = vmatmul.mubr.f32.vlgmr.msra.gmra.mrb[0].mxu0 %v1191_v23  ;;  %v794_v22 = vld [vmem:[#allocation5 + $0x270] sm:$0xff] }
  0x94   : > { %653 = vmatmul.mubr.f32.vlgmr.msra.gmra.mrb[0].mxu1 %v223_v24  ;;  %1388 = vmatprep.subr.bf16.mxu0 %v1691_v0  ;;  %v1215_v24 = vld [vmem:[%s1866_s26 + $0xe0] sm:$0xff] }
  0x95   : > { %1427 = vmatprep.subr.bf16.mxu1 %v1691_v0  ;;  %1390 = vmatpush1.bf16.msra.mxu0 %v1389_v25 }
  0x96   : > { %1441 = vmatpush1.bf16.msra.mxu1 %v1389_v25  ;;  %1224 = vmatprep.mubr.msk.f32.mxu0 %vm346_vm0, %v1194_v28  ;;  %v1218_v25 = vld [vmem:[%s1866_s26 + $0xf8] sm:$0xff] }
  0x97   : > { %1240 = vmatprep.mubr.msk.f32.mxu1 %vm346_vm0, %v226_v29  ;;  %465 = vmatmul.mubr.f32.gmra.mrb[2].mxu0 %v1193_v30  ;;  %v796_v29 = vld [vmem:[#allocation5 + $0x280] sm:$0xff] }
  0x98   : > { %658 = vmatmul.mubr.f32.gmra.mrb[2].mxu1 %v225_v31  ;;  %1391 = vmatprep.subr.bf16.mxu0 %v1691_v0  ;;  %v1222_v31 = vld [vmem:[%s1866_s26 + $0x118] sm:$0xff] }
  0x99   : > { %1428 = vmatprep.subr.bf16.mxu1 %v1691_v0  ;;  %1393 = vmatpush1.bf16.msra.mxu0 %v1392_v32 }
  0x9a   : > { %1442 = vmatpush1.bf16.msra.mxu1 %v1392_v32  ;;  %1225 = vmatprep.mubr.msk.f32.mxu0 %vm346_vm0, %v1922_v33  ;;  %v1283_v32 = vld [vmem:[%s1866_s26 + $0x120] sm:$0xff] }
  0x9b   : > { %1241 = vmatprep.mubr.msk.f32.mxu1 %vm346_vm0, %v1887_v35  ;;  %470 = vmatmul.mubr.f32.gmra.mrb[4].mxu0 %v1926_v37  ;;  %v1946_v35 = vld [vmem:[%s1866_s26 + $0x68] sm:$0xff] }
  0x9c   : > { %663 = vmatmul.mubr.f32.gmra.mrb[4].mxu1 %v1191_v23  ;;  %1394 = vmatprep.subr.bf16.mxu0 %v1691_v0  ;;  %v795_v23 = vld [vmem:[#allocation5 + $0x278] sm:$0xff] }
  0x9d   : > { %1429 = vmatprep.subr.bf16.mxu1 %v1691_v0  ;;  %1226 = vmatprep.mubr.msk.f32.mxu0 %vm346_vm0, %v1932_v38  ;;  %v1425_v26 = vpack.c.bf16 %v795_v23, %v794_v22 }
  0x9e   : > { %1242 = vmatprep.mubr.msk.f32.mxu1 %vm346_vm0, %v1194_v28  ;;  %1396 = vmatpush1.bf16.msra.mxu0 %v1395_v39  ;;  %v1220_v28 = vld [vmem:[%s1866_s26 + $0x108] sm:$0xff] }
  0x9f   : > { %1443 = vmatpush1.bf16.msra.mxu1 %v1395_v39  ;;  %475 = vmatmul.mubr.f32.gmra.mrb[6].mxu0 %v1939_v42 }
  0xa0   : > { %668 = vmatmul.mubr.f32.gmra.mrb[6].mxu1 %v1193_v30  ;;  %1397 = vmatprep.subr.bf16.mxu0 %v1691_v0  ;;  %v1219_v30 = vld [vmem:[%s1866_s26 + $0x100] sm:$0xff] }
  0xa1   : > { %1430 = vmatprep.subr.bf16.mxu1 %v1691_v0  ;;  %1227 = vmatprep.mubr.msk.f32.mxu0 %vm346_vm0, %v1946_v35 }
  0xa2   : > { %1243 = vmatprep.mubr.msk.f32.mxu1 %vm346_vm0, %v1922_v33  ;;  %1399 = vmatpush1.bf16.msra.mxu0 %v1398_v43 }
  0xa3   : > { %1444 = vmatpush1.bf16.msra.mxu1 %v1398_v43  ;;  %480 = vmatmul.mubr.f32.gmra.mrb[8].mxu0 %v1951_v46 }
  0xa4   : > { %673 = vmatmul.mubr.f32.gmra.mrb[8].mxu1 %v1926_v37  ;;  %1228 = vmatprep.mubr.msk.f32.mxu0 %vm346_vm0, %v1957_v47 }
  0xa5   : > { %1244 = vmatprep.mubr.msk.f32.mxu1 %vm346_vm0, %v1932_v38  ;;  %1400 = vmatprep.subr.bf16.mxu0 %v1691_v0 }
  0xa6   : > { %1431 = vmatprep.subr.bf16.mxu1 %v1691_v0  ;;  %1402 = vmatpush1.bf16.msra.mxu0 %v1401_v48 }
  0xa7   : > { %485 = vmatmul.mubr.f32.gmra.mrb[10].mxu0 %v1966_v51  ;;  %1445 = vmatpush1.bf16.msra.mxu1 %v1401_v48 }
  0xa8   : > { %678 = vmatmul.mubr.f32.gmra.mrb[10].mxu1 %v1939_v42  ;;  %1229 = vmatprep.mubr.msk.f32.mxu0 %vm346_vm0, %v1972_v52 }
  0xa9   : > { %1245 = vmatprep.mubr.msk.f32.mxu1 %vm346_vm0, %v1946_v35  ;;  %1403 = vmatprep.subr.bf16.mxu0 %v1691_v0 }
  0xaa   : > { %1432 = vmatprep.subr.bf16.mxu1 %v1691_v0  ;;  %1405 = vmatpush1.bf16.msra.mxu0 %v1404_v53 }
  0xab   : > { %490 = vmatmul.mubr.f32.gmra.mrb[12].mxu0 %v1980_v56  ;;  %1446 = vmatpush1.bf16.msra.mxu1 %v1404_v53 }
  0xac   : > { %683 = vmatmul.mubr.f32.gmra.mrb[12].mxu1 %v1951_v46  ;;  %1230 = vmatprep.mubr.msk.f32.mxu0 %vm346_vm0, %v1986_v57 }
  0xad   : > { %1246 = vmatprep.mubr.msk.f32.mxu1 %vm346_vm0, %v1957_v47  ;;  %1406 = vmatprep.subr.bf16.mxu0 %v1691_v0 }
  0xae   : > { %1433 = vmatprep.subr.bf16.mxu1 %v1691_v0  ;;  %1408 = vmatpush1.bf16.msra.mxu0 %v1407_v58 }
  0xaf   : > { %495 = vmatmul.mubr.f32.gmra.mrb[14].mxu0 %v1994_v61  ;;  %1447 = vmatpush1.bf16.msra.mxu1 %v1407_v58 }
  0xb0   : > { %688 = vmatmul.mubr.f32.gmra.mrb[14].mxu1 %v1966_v51  ;;  %1231 = vmatprep.mubr.msk.f32.mxu0 %vm346_vm0, %v2000_v62 }
  0xb1   : > { %1247 = vmatprep.mubr.msk.f32.mxu1 %vm346_vm0, %v1972_v52  ;;  %1409 = vmatprep.subr.bf16.mxu0 %v1691_v0 }
  0xb2   : > { %1434 = vmatprep.subr.bf16.mxu1 %v1691_v0  ;;  %1411 = vmatpush1.bf16.msra.mxu0 %v1410_v63 }
  0xb3   : > { %500 = vmatmul.mubr.f32.gmra.mrb[16].mxu0 %v2008_v3  ;;  %1448 = vmatpush1.bf16.msra.mxu1 %v1410_v63 }
  0xb4   : > { %693 = vmatmul.mubr.f32.gmra.mrb[16].mxu1 %v1980_v56  ;;  %1232 = vmatprep.mubr.msk.f32.mxu0 %vm346_vm0, %v2014_v4 }
  0xb5   : > { %1248 = vmatprep.mubr.msk.f32.mxu1 %vm346_vm0, %v1986_v57  ;;  %1412 = vmatprep.subr.bf16.mxu0 %v1691_v0 }
  0xb6   : > { %1435 = vmatprep.subr.bf16.mxu1 %v1691_v0  ;;  %1414 = vmatpush1.bf16.msra.mxu0 %v1413_v5 }
  0xb7   : > { %505 = vmatmul.mubr.f32.gmra.mrb[18].mxu0 %v2022_v8  ;;  %1449 = vmatpush1.bf16.msra.mxu1 %v1413_v5 }
  0xb8   : > { %698 = vmatmul.mubr.f32.gmra.mrb[18].mxu1 %v1994_v61  ;;  %1233 = vmatprep.mubr.msk.f32.mxu0 %vm346_vm0, %v2028_v9 }
  0xb9   : > { %1249 = vmatprep.mubr.msk.f32.mxu1 %vm346_vm0, %v2000_v62  ;;  %1415 = vmatprep.subr.bf16.mxu0 %v1691_v0 }
  0xba   : > { %1436 = vmatprep.subr.bf16.mxu1 %v1691_v0  ;;  %1417 = vmatpush1.bf16.msra.mxu0 %v1416_v10 }
  0xbb   : > { %510 = vmatmul.mubr.f32.gmra.mrb[20].mxu0 %v2036_v13  ;;  %1450 = vmatpush1.bf16.msra.mxu1 %v1416_v10 }
  0xbc   : > { %703 = vmatmul.mubr.f32.gmra.mrb[20].mxu1 %v2008_v3  ;;  %1234 = vmatprep.mubr.msk.f32.mxu0 %vm346_vm0, %v2042_v14 }
  0xbd   : > { %1250 = vmatprep.mubr.msk.f32.mxu1 %vm346_vm0, %v2014_v4  ;;  %1418 = vmatprep.subr.bf16.mxu0 %v1691_v0 }
  0xbe   : > { %1437 = vmatprep.subr.bf16.mxu1 %v1691_v0  ;;  %1420 = vmatpush1.bf16.msra.mxu0 %v1419_v15 }
  0xbf   : > { %515 = vmatmul.mubr.f32.gmra.mrb[22].mxu0 %v1213_v18  ;;  %1451 = vmatpush1.bf16.msra.mxu1 %v1419_v15 }
  0xc0   : > { %708 = vmatmul.mubr.f32.gmra.mrb[22].mxu1 %v2022_v8  ;;  %1235 = vmatprep.mubr.msk.f32.mxu0 %vm346_vm0, %v1216_v19 }
  0xc1   : > { %1251 = vmatprep.mubr.msk.f32.mxu1 %vm346_vm0, %v2028_v9  ;;  %1421 = vmatprep.subr.bf16.mxu0 %v1691_v0 }
  0xc2   : > { %1438 = vmatprep.subr.bf16.mxu1 %v1691_v0  ;;  %1423 = vmatpush1.bf16.msra.mxu0 %v1422_v21 }
  0xc3   : > { %520 = vmatmul.mubr.f32.gmra.mrb[24].mxu0 %v1215_v24  ;;  %1452 = vmatpush1.bf16.msra.mxu1 %v1422_v21 }
  0xc4   : > { %713 = vmatmul.mubr.f32.gmra.mrb[24].mxu1 %v2036_v13  ;;  %1236 = vmatprep.mubr.msk.f32.mxu0 %vm346_vm0, %v1218_v25 }
  0xc5   : > { %1252 = vmatprep.mubr.msk.f32.mxu1 %vm346_vm0, %v2042_v14  ;;  %1424 = vmatprep.subr.bf16.mxu0 %v1691_v0 }
  0xc6   : > { %1439 = vmatprep.subr.bf16.mxu1 %v1691_v0  ;;  %1426 = vmatpush1.bf16.msra.mxu0 %v1425_v26  ;;  %v1221_v0 = vld [vmem:[%s1866_s26 + $0x110] sm:$0xff] }
  0xc7   : > { %525 = vmatmul.mubr.f32.gmra.mrb[26].mxu0 %v1217_v27  ;;  %1453 = vmatpush1.bf16.msra.mxu1 %v1425_v26 }
  0xc8   : > { %718 = vmatmul.mubr.f32.gmra.mrb[26].mxu1 %v1213_v18  ;;  %1237 = vmatprep.mubr.msk.f32.mxu0 %vm346_vm0, %v1220_v28 }
  0xc9   : > { %1253 = vmatprep.mubr.msk.f32.mxu1 %vm346_vm0, %v1216_v19  ;;  %897 = vmatprep.subr.mxu0 %v1692_v20 }
  0xca   : > { %1440 = vmatprep.subr.mxu1 %v1692_v20  ;;  %898 = vmatpush1.msra.mxu0 %v796_v29  ;;  %v1284_v20 = vld [vmem:[%s1866_s26 + $0x128] sm:$0xff] }
  0xcb   : > { %530 = vmatmul.mubr.f32.gmra.mrb[28].mxu0 %v1219_v30  ;;  %1454 = vmatpush1.msra.mxu1 %v796_v29 }
  0xcc   : > { %723 = vmatmul.mubr.f32.gmra.mrb[28].mxu1 %v1215_v24  ;;  %1238 = vmatprep.mubr.msk.f32.mxu0 %vm346_vm0, %v1222_v31 }
  0xcd   : > { %1254 = vmatprep.mubr.msk.f32.mxu1 %vm346_vm0, %v1218_v25 }
  0xcf   : > { %535 = vmatmul.mubr.f32.gmra.mrb[30].mxu0 %v1221_v0 }
  0xd0   : > { %728 = vmatmul.mubr.f32.gmra.mrb[30].mxu1 %v1217_v27  ;;  %1287 = vmatprep.mubr.msk.f32.mxu0 %vm346_vm0, %v1922_v33  ;;  %v1286_v33 = vld [vmem:[%s1866_s26 + $0x138] sm:$0xff] }
  0xd1   : > { %1295 = vmatprep.mubr.msk.f32.mxu1 %vm346_vm0, %v2028_v9 }
  0xd3   : > { %910 = vmatmul.mubr.f32.vlgmr.msra.gmra.mrb[32].mxu0 %v1926_v37 }
  0xd4   : > { %950 = vmatmul.mubr.f32.vlgmr.msra.gmra.mrb[32].mxu1 %v2036_v13  ;;  %1288 = vmatprep.mubr.msk.f32.mxu0 %vm346_vm0, %v1932_v38 }
  0xd5   : > { %1296 = vmatprep.mubr.msk.f32.mxu1 %vm346_vm0, %v2042_v14 }
  0xd7   : > { %915 = vmatmul.mubr.f32.gmra.mrb[34].mxu0 %v1939_v42 }
  0xd8   : > { %955 = vmatmul.mubr.f32.gmra.mrb[34].mxu1 %v1213_v18  ;;  %1289 = vmatprep.mubr.msk.f32.mxu0 %vm346_vm0, %v1946_v35 }
  0xd9   : > { %1297 = vmatprep.mubr.msk.f32.mxu1 %vm346_vm0, %v1216_v19 }
  0xdb   : > { %920 = vmatmul.mubr.f32.gmra.mrb[36].mxu0 %v1951_v46 }
  0xdc   : > { %960 = vmatmul.mubr.f32.gmra.mrb[36].mxu1 %v1215_v24  ;;  %1290 = vmatprep.mubr.msk.f32.mxu0 %vm346_vm0, %v1957_v47 }
  0xdd   : > { %1298 = vmatprep.mubr.msk.f32.mxu1 %vm346_vm0, %v1218_v25 }
  0xdf   : > { %925 = vmatmul.mubr.f32.gmra.mrb[38].mxu0 %v1966_v51 }
  0xe0   : > { %965 = vmatmul.mubr.f32.gmra.mrb[38].mxu1 %v1217_v27  ;;  %1291 = vmatprep.mubr.msk.f32.mxu0 %vm346_vm0, %v1972_v52 }
  0xe1   : > { %1299 = vmatprep.mubr.msk.f32.mxu1 %vm346_vm0, %v1220_v28 }
  0xe3   : > { %930 = vmatmul.mubr.f32.gmra.mrb[40].mxu0 %v1980_v56 }
  0xe4   : > { %970 = vmatmul.mubr.f32.gmra.mrb[40].mxu1 %v1219_v30  ;;  %1292 = vmatprep.mubr.msk.f32.mxu0 %vm346_vm0, %v1986_v57 }
  0xe5   : > { %1300 = vmatprep.mubr.msk.f32.mxu1 %vm346_vm0, %v1222_v31 }
  0xe7   : > { %935 = vmatmul.mubr.f32.gmra.mrb[42].mxu0 %v1994_v61 }
  0xe8   : > { %975 = vmatmul.mubr.f32.gmra.mrb[42].mxu1 %v1221_v0  ;;  %1293 = vmatprep.mubr.msk.f32.mxu0 %vm346_vm0, %v2000_v62 }
  0xe9   : > { %1301 = vmatprep.mubr.msk.f32.mxu1 %vm346_vm0, %v1284_v20 }
  0xeb   : > { %940 = vmatmul.mubr.f32.gmra.mrb[44].mxu0 %v2008_v3 }
  0xec   : > { %980 = vmatmul.mubr.f32.gmra.mrb[44].mxu1 %v1283_v32  ;;  %1294 = vmatprep.mubr.msk.f32.mxu0 %vm346_vm0, %v2014_v4 }
  0xed   : > { %1302 = vmatprep.mubr.msk.f32.mxu1 %vm346_vm0, %v1286_v33 }
  0xef   : > { %945 = vmatmul.mubr.f32.gmra.mrb[46].mxu0 %v2022_v8 }
  0xf0   : > { %985 = vmatmul.mubr.f32.gmra.mrb[46].mxu1 %v1285_v34 }
 0x166   : > { %v461_v36 = vpop.f32.mrb[0].mxu0 }
 0x167   : > { %v654_v37 = vpop.f32.mrb[0].mxu1  ;;  %v463_v38 = vpop.f32.mrb[1].mxu0 }
 0x168   : > { %v2119_v39 = vadd.f32 %v654_v37, %v461_v36  ;;  %v656_v40 = vpop.f32.mrb[1].mxu1 }
 0x16a   : > { %v466_v41 = vpop.f32.mrb[2].mxu0 }
 0x16b   : > { %v659_v42 = vpop.f32.mrb[2].mxu1  ;;  %v468_v35 = vpop.f32.mrb[3].mxu0 }
 0x16c   : > { %v2121_v43 = vadd.f32 %v659_v42, %v466_v41  ;;  %v661_v44 = vpop.f32.mrb[3].mxu1 }
 0x16e   : > { %v471_v45 = vpop.f32.mrb[4].mxu0 }
 0x16f   : > { %v664_v46 = vpop.f32.mrb[4].mxu1  ;;  %v473_v47 = vpop.f32.mrb[5].mxu0 }
 0x170   : > { %v2123_v48 = vadd.f32 %v664_v46, %v471_v45  ;;  %v666_v49 = vpop.f32.mrb[5].mxu1 }
 0x172   : > { %v476_v50 = vpop.f32.mrb[6].mxu0 }
 0x173   : > { %v669_v51 = vpop.f32.mrb[6].mxu1  ;;  %v478_v52 = vpop.f32.mrb[7].mxu0 }
 0x174   : > { %v2125_v53 = vadd.f32 %v669_v51, %v476_v50  ;;  %v671_v54 = vpop.f32.mrb[7].mxu1 }
 0x176   : > { %v481_v55 = vpop.f32.mrb[8].mxu0 }
 0x177   : > { %v674_v56 = vpop.f32.mrb[8].mxu1  ;;  %v483_v57 = vpop.f32.mrb[9].mxu0 }
 0x178   : > { %v2127_v58 = vadd.f32 %v674_v56, %v481_v55  ;;  %v676_v59 = vpop.f32.mrb[9].mxu1  ;;  %v2148_v56 = vld [vmem:[%s2256_s2] ss:$0 sm:$0xff] }
 0x17a   : > { %v486_v60 = vpop.f32.mrb[10].mxu0 }
 0x17b   : > { %v679_v61 = vpop.f32.mrb[10].mxu1  ;;  %v488_v62 = vpop.f32.mrb[11].mxu0 }
 0x17c   : > { %v2129_v63 = vadd.f32 %v679_v61, %v486_v60  ;;  %v681_v1 = vpop.f32.mrb[11].mxu1 }
 0x17e   : > { %v491_v2 = vpop.f32.mrb[12].mxu0 }
 0x17f   : > { %v684_v3 = vpop.f32.mrb[12].mxu1  ;;  %v493_v4 = vpop.f32.mrb[13].mxu0 }
 0x180   : > { %v2131_v5 = vadd.f32 %v684_v3, %v491_v2  ;;  %v686_v6 = vpop.f32.mrb[13].mxu1 }
 0x182   : > { %v496_v7 = vpop.f32.mrb[14].mxu0 }
 0x183   : > { %v689_v8 = vpop.f32.mrb[14].mxu1  ;;  %v498_v9 = vpop.f32.mrb[15].mxu0 }
 0x184   : > { %v2133_v10 = vadd.f32 %v689_v8, %v496_v7  ;;  %v691_v11 = vpop.f32.mrb[15].mxu1 }
 0x186   : > { %v501_v12 = vpop.f32.mrb[16].mxu0 }
 0x187   : > { %v694_v13 = vpop.f32.mrb[16].mxu1  ;;  %v503_v14 = vpop.f32.mrb[17].mxu0 }
 0x188   : > { %v695_v15 = vadd.f32 %v694_v13, %v501_v12  ;;  %v696_v16 = vpop.f32.mrb[17].mxu1 }
 0x18a   : > { %v506_v17 = vpop.f32.mrb[18].mxu0 }
 0x18b   : > { %v699_v18 = vpop.f32.mrb[18].mxu1  ;;  %v508_v19 = vpop.f32.mrb[19].mxu0 }
 0x18c   : > { %v700_v21 = vadd.f32 %v699_v18, %v506_v17  ;;  %v701_v22 = vpop.f32.mrb[19].mxu1 }
 0x18e   : > { %v511_v23 = vpop.f32.mrb[20].mxu0 }
 0x18f   : > { %v704_v24 = vpop.f32.mrb[20].mxu1  ;;  %v513_v25 = vpop.f32.mrb[21].mxu0 }
 0x190   : > { %v705_v26 = vadd.f32 %v704_v24, %v511_v23  ;;  %v706_v27 = vpop.f32.mrb[21].mxu1 }
 0x192   : > { %v516_v28 = vpop.f32.mrb[22].mxu0 }
 0x193   : > { %v709_v29 = vpop.f32.mrb[22].mxu1  ;;  %v518_v30 = vpop.f32.mrb[23].mxu0 }
 0x194   : > { %v2135_v31 = vadd.f32 %v709_v29, %v516_v28  ;;  %v711_v0 = vpop.f32.mrb[23].mxu1 }
 0x196   : > { %v521_v20 = vpop.f32.mrb[24].mxu0 }
 0x197   : > { %v714_v32 = vpop.f32.mrb[24].mxu1  ;;  %v523_v33 = vpop.f32.mrb[25].mxu0 }
 0x198   : > { %v2137_v34 = vadd.f32 %v714_v32, %v521_v20  ;;  %v716_v36 = vpop.f32.mrb[25].mxu1 }
 0x19a   : > { %v526_v37 = vpop.f32.mrb[26].mxu0 }
 0x19b   : > { %v719_v38 = vpop.f32.mrb[26].mxu1  ;;  %v528_v40 = vpop.f32.mrb[27].mxu0 }
 0x19c   : > { %v2139_v41 = vadd.f32 %v719_v38, %v526_v37  ;;  %v721_v42 = vpop.f32.mrb[27].mxu1 }
 0x19e   : > { %v531_v35 = vpop.f32.mrb[28].mxu0 }
 0x19f   : > { %v724_v44 = vpop.f32.mrb[28].mxu1  ;;  %v533_v45 = vpop.f32.mrb[29].mxu0 }
 0x1a0   : > { %v2141_v46 = vadd.f32 %v724_v44, %v531_v35  ;;  %v726_v47 = vpop.f32.mrb[29].mxu1 }
 0x1a2   : > { %v536_v49 = vpop.f32.mrb[30].mxu0 }
 0x1a3   : > { %v729_v50 = vpop.f32.mrb[30].mxu1  ;;  %v538_v51 = vpop.f32.mrb[31].mxu0 }
 0x1a4   : > { %v2143_v52 = vadd.f32 %v729_v50, %v536_v49  ;;  %v731_v54 = vpop.f32.mrb[31].mxu1 }
 0x1a6   : > { %v911_v55 = vpop.f32.mrb[32].mxu0 }
 0x1a7   : > { %v990_v57 = vadd.f32 %v911_v55, %v2119_v39  ;;  %v951_v59 = vpop.f32.mrb[32].mxu1  ;;  %v913_v60 = vpop.f32.mrb[33].mxu0 }
 0x1a8   : > { %v998_v61 = vadd.f32 %v951_v59, %v695_v15  ;;  %v953_v62 = vpop.f32.mrb[33].mxu1 }
 0x1a9   : > { %v1013_v1 = vadd.f32 %v2148_v56, %v990_v57 }
 0x1aa   : > { %v1021_v2 = vadd.f32 %v2148_v56, %v998_v61  ;;  %v916_v3 = vpop.f32.mrb[34].mxu0 }
 0x1ab   : > { %v1029_v4 = vmax.f32 %v1013_v1, 0.0  ;;  %v991_v6 = vadd.f32 %v916_v3, %v2121_v43  ;;  %v956_v7 = vpop.f32.mrb[34].mxu1  ;;  %v918_v8 = vpop.f32.mrb[35].mxu0 }
 0x1ac   : > { %v1037_v9 = vmax.f32 %v1021_v2, 0.0  ;;  %v999_v11 = vadd.f32 %v956_v7, %v700_v21  ;;  %v958_v12 = vpop.f32.mrb[35].mxu1 }
 0x1ad   : > { %1045 = vst [vmem:[%s2155_s7] sm:$0xff] %v1029_v4  ;;  %v1014_v39 = vadd.f32 %v2148_v56, %v991_v6 }
 0x1ae   : > { %1053 = vst [vmem:[%s2155_s7 + $0x40] sm:$0xff] %v1037_v9  ;;  %v1022_v13 = vadd.f32 %v2148_v56, %v999_v11  ;;  %v921_v14 = vpop.f32.mrb[36].mxu0 }
 0x1af   : > { %v1030_v15 = vmax.f32 %v1014_v39, 0.0  ;;  %v992_v43 = vadd.f32 %v921_v14, %v2123_v48  ;;  %v961_v16 = vpop.f32.mrb[36].mxu1  ;;  %v923_v17 = vpop.f32.mrb[37].mxu0 }
 0x1b0   : > { %v1038_v18 = vmax.f32 %v1022_v13, 0.0  ;;  %v1000_v19 = vadd.f32 %v961_v16, %v705_v26  ;;  %v963_v21 = vpop.f32.mrb[37].mxu1 }
 0x1b1   : > { %1046 = vst [vmem:[%s2155_s7 + $0x8] sm:$0xff] %v1030_v15  ;;  %v1015_v22 = vadd.f32 %v2148_v56, %v992_v43 }
 0x1b2   : > { %1054 = vst [vmem:[%s2155_s7 + $0x48] sm:$0xff] %v1038_v18  ;;  %v1023_v23 = vadd.f32 %v2148_v56, %v1000_v19  ;;  %v926_v24 = vpop.f32.mrb[38].mxu0 }
 0x1b3   : > { %v1031_v25 = vmax.f32 %v1015_v22, 0.0  ;;  %v993_v27 = vadd.f32 %v926_v24, %v2125_v53  ;;  %v966_v28 = vpop.f32.mrb[38].mxu1  ;;  %v928_v29 = vpop.f32.mrb[39].mxu0 }
 0x1b4   : > { %v1039_v48 = vmax.f32 %v1023_v23, 0.0  ;;  %v1001_v30 = vadd.f32 %v966_v28, %v2135_v31  ;;  %v968_v26 = vpop.f32.mrb[39].mxu1 }
 0x1b5   : > { %1047 = vst [vmem:[%s2155_s7 + $0x10] sm:$0xff] %v1031_v25  ;;  %v1016_v0 = vadd.f32 %v2148_v56, %v993_v27 }
 0x1b6   : > { %1055 = vst [vmem:[%s2155_s7 + $0x50] sm:$0xff] %v1039_v48  ;;  %v1024_v20 = vadd.f32 %v2148_v56, %v1001_v30  ;;  %v931_v32 = vpop.f32.mrb[40].mxu0 }
 0x1b7   : > { %v1032_v33 = vmax.f32 %v1016_v0, 0.0  ;;  %v994_v36 = vadd.f32 %v931_v32, %v2127_v58  ;;  %v971_v37 = vpop.f32.mrb[40].mxu1  ;;  %v933_v53 = vpop.f32.mrb[41].mxu0 }
 0x1b8   : > { %v1040_v38 = vmax.f32 %v1024_v20, 0.0  ;;  %v1002_v40 = vadd.f32 %v971_v37, %v2137_v34  ;;  %v973_v31 = vpop.f32.mrb[41].mxu1 }
 0x1b9   : > { %1048 = vst [vmem:[%s2155_s7 + $0x18] sm:$0xff] %v1032_v33  ;;  %v1017_v42 = vadd.f32 %v2148_v56, %v994_v36 }
 0x1ba   : > { %1056 = vst [vmem:[%s2155_s7 + $0x58] sm:$0xff] %v1040_v38  ;;  %v1025_v35 = vadd.f32 %v2148_v56, %v1002_v40  ;;  %v936_v44 = vpop.f32.mrb[42].mxu0 }
 0x1bb   : > { %v1033_v45 = vmax.f32 %v1017_v42, 0.0  ;;  %v995_v47 = vadd.f32 %v936_v44, %v2129_v63  ;;  %v976_v49 = vpop.f32.mrb[42].mxu1  ;;  %v938_v58 = vpop.f32.mrb[43].mxu0 }
 0x1bc   : > { %v1041_v50 = vmax.f32 %v1025_v35, 0.0  ;;  %v1003_v51 = vadd.f32 %v976_v49, %v2139_v41  ;;  %v978_v34 = vpop.f32.mrb[43].mxu1 }
 0x1bd   : > { %1049 = vst [vmem:[%s2155_s7 + $0x20] sm:$0xff] %v1033_v45  ;;  %v1018_v54 = vadd.f32 %v2148_v56, %v995_v47 }
 0x1be   : > { %1057 = vst [vmem:[%s2155_s7 + $0x60] sm:$0xff] %v1041_v50  ;;  %v1026_v55 = vadd.f32 %v2148_v56, %v1003_v51  ;;  %v941_v57 = vpop.f32.mrb[44].mxu0 }
 0x1bf   : > { %v1034_v59 = vmax.f32 %v1018_v54, 0.0  ;;  %v996_v60 = vadd.f32 %v941_v57, %v2131_v5  ;;  %v981_v61 = vpop.f32.mrb[44].mxu1  ;;  %v943_v63 = vpop.f32.mrb[45].mxu0 }
 0x1c0   : > { %v1042_v62 = vmax.f32 %v1026_v55, 0.0  ;;  %v1004_v1 = vadd.f32 %v981_v61, %v2141_v46  ;;  %v983_v41 = vpop.f32.mrb[45].mxu1 }
 0x1c1   : > { %1050 = vst [vmem:[%s2155_s7 + $0x28] sm:$0xff] %v1034_v59  ;;  %v1019_v2 = vadd.f32 %v2148_v56, %v996_v60 }
 0x1c2   : > { %1058 = vst [vmem:[%s2155_s7 + $0x68] sm:$0xff] %v1042_v62  ;;  %v1027_v3 = vadd.f32 %v2148_v56, %v1004_v1  ;;  %v946_v4 = vpop.f32.mrb[46].mxu0 }
 0x1c3   : > { %v1035_v6 = vmax.f32 %v1019_v2, 0.0  ;;  %v997_v5 = vadd.f32 %v946_v4, %v2133_v10  ;;  %v986_v7 = vpop.f32.mrb[46].mxu1  ;;  %v948_v8 = vpop.f32.mrb[47].mxu0 }
 0x1c4   : > { %v1043_v9 = vmax.f32 %v1027_v3, 0.0  ;;  %v1005_v46 = vadd.f32 %v986_v7, %v2143_v52  ;;  %v988_v11 = vpop.f32.mrb[47].mxu1 }
 0x1c5   : > { %1051 = vst [vmem:[%s2155_s7 + $0x30] sm:$0xff] %v1035_v6  ;;  %v1020_v12 = vadd.f32 %v2148_v56, %v997_v5 }
 0x1c6   : > { %1059 = vst [vmem:[%s2155_s7 + $0x70] sm:$0xff] %v1043_v9  ;;  %v1028_v39 = vadd.f32 %v2148_v56, %v1005_v46 }
 0x1c7   : > { %v1036_v13 = vmax.f32 %v1020_v12, 0.0 }
 0x1c8   : > { %v1044_v10 = vmax.f32 %v1028_v39, 0.0 }
 0x1c9   : > { %1052 = vst [vmem:[%s2155_s7 + $0x38] sm:$0xff] %v1036_v13 }
 0x1ca   : > { %1060 = vst [vmem:[%s2155_s7 + $0x78] sm:$0xff] %v1044_v10 }
 0x1cb   : > { %1610 = shalt.err (!%p1607_p5)
}
 0x1cc   : > { %s1611_s30 = scalar_lea.hbm %s2201_s6, 2048  ;;  %s1615_s20 = scalar_lea.hbm %s2257_s3, 4096 }
 0x1cd   : > { %p1612_p9 = scmp.ne.s32.totalorder %s2201_s6, %s1611_s30  ;;  %p1616_p3 = scmp.lt.u32.totalorder %s2201_s6, %s2257_s3 }
 0x1ce   : > { %p1617_p7 = scmp.lt.u32.totalorder %s1615_s20, %s1611_s30  ;;  %p1619_p4 = scmp.lt.u32.totalorder %s1611_s30, %s2201_s6 }
 0x1cf   : > { %p1613_p1 = pnand %p1612_p9, %p1808_p10 }
 0x1d0   : > { %p1618_p11 = por %p1617_p7, %p1616_p3 }
 0x1d1   : > { %p1614_p2 = pneg %p1613_p1 }
 0x1d2   : > { %p1620_p6 = por %p1619_p4, %p1618_p11 }
 0x1d4   : > { %p1621_p8 = pnand %p1620_p6, %p1614_p2 }
 0x1d6   : > { %1624 = shalt.err (!%p1621_p8)
}
 0x1d7   : > { %s1694_s7 = smov 128   ;;  %s1695_s8 = smov 8  }
 0x1d8   : > { %1464 = dma.vmem_to_hbm [thread:$0]  (%p1808_p10), %s2203_s10, 2048, %s2201_s6, %s1062_s15, %s1694_s7, %s1694_s7, %s1695_s8  }
 0x1d9 PF: > { %s1093_s11 = sand.u32 1, %s1663_s12   ;;  %p2274_p12 = scmp.ne.s32.totalorder %s2265_s23, 0 }
 0x1da   : > { %p2275_p13 = scmp.ge.s32.totalorder %s1683_s17, 2  ;;  %s1094_s27 = scalar_lea.sflag [#allocation4], %s1093_s11 }
 0x1dc   : > { %p1475_p0 = pnand %p2275_p13, %p2274_p12 }
 0x1de   : > { %1658 = dma.done.wait (!%p1475_p0), %s1094_s27, 2048  }
 0x1df   : > { %1660 = vsyncadd (!%p1475_p0), %s1094_s27, 4294965248  ;;  %s20_s17 = sadd.s32 1, %s1683_s17   ;;  %s2276_s12 = smov %s1667_s13 }
 0x1e0   : > { %p17_p5 = scmp.ge.s32.totalorder %s20_s17, 4   ;;  %s2277_s13 = smov %s1671_s14 }
 0x1e1   : > { %s2278_s14 = smov %s1817_s5  ;;  %s2279_s15 = smov %s1679_s16 }
 0x1e2   : > { %s2280_s16 = smov %s2282_s28  ;;  %19 = sbr.rel (!%p17_p5) target bundleno = 7 (0x7), region = 86 }
 0x1e9   :  { %1099 = vsyncpa [#allocation3], 1 }
 0x1ea   :  { %1101 = vsyncpa [#allocation3 + $0x1], 1 }
 0x1eb   :  { %1102 = vsyncpa [#allocation6], 1 }
 0x1ec   :  { %1103 = vsyncpa [#allocation4], 1 }
 0x1ed   :  { %1105 = vsyncpa [#allocation4 + $0x1], 1 }

// kernel: tpu_custom_call.1
= control target key start
LH: loop header
LB: loop body
LE: loop exit
PB: predicated region body
PF: predicated region fallthrough
CT: control target
= control target key end

     0   :  { %8 = vsyncpa [#allocation3], 0  ;;  %s2254_s0 = inlined_call_operand.hbm [shape: f32[2,10,16,216], index: 0, kind: input, shape index: {}]   ;;  %s2255_s1 = inlined_call_operand.hbm [shape: f32[3,216,128], index: 1, kind: input, shape index: {}]   ;;  %s2256_s2 = inlined_call_operand.vmem [shape: f32[1,128], index: 2, kind: input, shape index: {}]   ;;  %s2257_s3 = inlined_call_operand.hbm [shape: f32[2,8,16,128], index: 3, kind: output, shape index: {}]  }
   0x1   :  { %10 = vsyncpa [#allocation3 + $0x1], 0 }
   0x2   :  { %11 = vsyncpa [#allocation6], 0 }
   0x3   :  { %12 = vsyncpa [#allocation4], 0 }
   0x4   :  { %14 = vsyncpa [#allocation4 + $0x1], 0  ;;  %s1716_s12 = smov 0   ;;  %s1718_s13 = smov 0  }
   0x5   :  { %s1720_s14 = smov 0   ;;  %s1722_s15 = smov 0  }
   0x6   :  { %s1724_s16 = smov 0   ;;  %s1726_s17 = smov 0  }
   0x7 LB: > { %s1182_s18 = sadd.s32 4294967295, %s1683_s17   ;;  %s1183_s19 = sadd.s32 4294967294, %s1683_s17   ;;  %s1683_s17 = sphi %s1726_s17, %s20_s17   ;;  %s1679_s16 = sphi %s1724_s16, %s2280_s16   ;;  %s1675_s15 = sphi %s1722_s15, %s2279_s15   ;;  %s1671_s14 = sphi %s1720_s14, %s2278_s14   ;;  %s1667_s13 = sphi %s1718_s13, %s2277_s13   ;;  %s1663_s12 = sphi %s1716_s12, %s2276_s12  }
   0x8   : > { %p52_p0 = scmp.ne.s32.totalorder %s1667_s13, %s1663_s12  ;;  %p1750_p1 = scmp.eq.s32.totalorder %s1182_s18, 0 }
   0x9   : > { %p1754_p2 = scmp.eq.s32.totalorder %s1182_s18, 1  ;;  %p126_p3 = scmp.eq.s32.totalorder %s1183_s19, 1 }
   0xa   : > { %s2262_s20 = scalar_select %p1750_p1, 1, 0 }
   0xb   : > { %s2263_s21 = scalar_select %p1754_p2, 1, 0 }
   0xc   : > { %p1760_p4 = por %p1750_p1, %p52_p0  ;;  %p1184_p5 = scmp.ge.s32.totalorder %s1683_s17, 1 }
   0xd   : > { %p1765_p6 = por %p126_p3, %p52_p0  ;;  %p133_p7 = scmp.lt.s32.totalorder %s1683_s17, 3 }
   0xe   : > { %s2264_s22 = scalar_select %p1760_p4, 1, 0 }
   0xf   : > { %s2265_s23 = scalar_select %p1765_p6, 1, 0 }
  0x10   : > { %p1770_p8 = pnand %p1184_p5, %p133_p7  ;;  %s1685_s25 = smov [#allocation5]  }
  0x11   : > { %s145_s26 = sshll.u32 %s1685_s25, 4  ;;  %s32_s28 = sadd.s32 1, %s1679_s16  ;;  %s146_s26 = int_to_ptr.vmem [resolvable:$true] %s145_s26 }
  0x12   : > { %s2266_s24 = scalar_select %p1770_p8, 1, 0 }
  0x13   : > { %p1466_p9 = pneg %p1770_p8  ;;  %s1539_s4 = scalar_lea.hbm %s2255_s1, 10368 }
  0x14   : > { %p1540_p12 = scmp.ne.s32.totalorder %s2255_s1, %s1539_s4  ;;  %p1546_p5 = scmp.lt.u32.totalorder %s1539_s4, %s2255_s1 }
  0x15   : > { %p1779_p11 = pnand %p1466_p9, %p1750_p1 }
  0x17   : > { %p1541_p13 = pneg %p1779_p11 }
  0x19   : > { %p1542_p0 = pnand %p1541_p13, %p1540_p12 }
  0x1b   : > { %p1543_p3 = pneg %p1542_p0 }
  0x1d   : > { %p1548_p7 = pnand %p1546_p5, %p1543_p3 }
  0x1f   : > { %1551 = shalt.err (!%p1548_p7)
}
  0x20   : > { %s1552_s9 = scalar_lea.vmem %s146_s26, 10368  ;;  %p1560_p1 = scmp.lt.s32.totalorder %s146_s26, %s146_s26 }
  0x21   : > { %p1553_p9 = scmp.ne.s32.totalorder %s146_s26, %s1552_s9  ;;  %p1561_p4 = scmp.lt.s32.totalorder %s1552_s9, %s1552_s9 }
  0x23   : > { %p1555_p10 = pnand %p1553_p9, %p1541_p13  ;;  %p1562_p8 = por %p1561_p4, %p1560_p1 }
  0x25   : > { %p1556_p6 = pneg %p1555_p10 }
  0x27   : > { %p1563_p2 = pnand %p1562_p8, %p1556_p6 }
  0x29   : > { %1566 = shalt.err (!%p1563_p2)
}
  0x2a   : > { %s1686_s10 = smov 128   ;;  %s1687_s11 = smov 8  }
  0x2b   : > { %1469 = dma.hbm_to_vmem [thread:$0]  (!%p1779_p11), %s2255_s1, 10368, %s146_s26, [#allocation6], %s1686_s10, %s1686_s10, %s1687_s11  }
  0x2c   : > { %p34_p1 = scmp.ge.s32.totalorder %s32_s28, 2  ;;  %s39_s25 = sadd.s32 1, %s1671_s14 }
  0x2d   : > { %p46_p2 = scmp.ne.s32.totalorder %s1671_s14, %s1667_s13  ;;  %p47_p4 = scmp.eq.s32.totalorder %s1683_s17, 0 }
  0x2e   : > { %s2282_s28 = smov (%p34_p1, %s32_s28), 0  ;;  %p2268_p8 = scmp.ne.s32.totalorder %s2263_s21, 0 }
  0x2f   : > { %p48_p6 = por %p47_p4, %p46_p2  ;;  %s36_s30 = ssub.s32 %s1679_s16, %s2282_s28 }
  0x30   : > { %p1808_p10 = por %p2268_p8, %p46_p2  ;;  %p1479_p12 = scmp.lt.s32.totalorder %s1683_s17, 2 }
  0x31   : > { %p37_p13 = scmp.eq.s32.totalorder %s36_s30, 0  ;;  %s162_s27 = sand.u32 1, %s1671_s14  }
  0x32   : > { %s1455_s4 = smul.u32 320, %s162_s27  ;;  %p1820_p11 = pnand %p1479_p12, %p48_p6 }
  0x33   : > { %s1817_s5 = scalar_select %p37_p13, %s1671_s14, %s39_s25  }
  0x34   : > { %s1456_s26 = smul.u32 5120, %s1679_s16  ;;  %s166_s6 = scalar_lea.vmem [#allocation2], %s1455_s4 }
  0x35   : > { %s173_s7 = sshll.u32 %s166_s6, 4  ;;  %s1831_s11 = scalar_lea.sflag [#allocation3], %s162_s27  ;;  %s1829_s7 = int_to_ptr.vmem [resolvable:$true] %s173_s7 }
  0x36   : > { %s1827_s10 = scalar_lea.hbm %s2254_s0, %s1456_s26  ;;  %p1569_p3 = pneg %p1820_p11 }
  0x37   : > { %s1567_s18 = scalar_lea.hbm %s1827_s10, 5120  ;;  %s1572_s30 = scalar_lea.hbm %s2254_s0, 10240 }
  0x38   : > { %p1568_p0 = scmp.ne.s32.totalorder %s1827_s10, %s1567_s18  ;;  %p1573_p9 = scmp.lt.u32.totalorder %s1827_s10, %s2254_s0 }
  0x39   : > { %p1574_p1 = scmp.lt.u32.totalorder %s1572_s30, %s1567_s18  ;;  %p1576_p4 = scmp.lt.u32.totalorder %s1567_s18, %s1827_s10 }
  0x3a   : > { %p1570_p5 = pnand %p1569_p3, %p1568_p0 }
  0x3b   : > { %p1575_p2 = por %p1574_p1, %p1573_p9 }
  0x3c   : > { %p1571_p7 = pneg %p1570_p5 }
  0x3d   : > { %p1577_p6 = por %p1576_p4, %p1575_p2 }
  0x3f   : > { %p1578_p8 = pnand %p1577_p6, %p1571_p7 }
  0x41   : > { %1581 = shalt.err (!%p1578_p8)
}
  0x42   : > { %s1582_s27 = scalar_lea.vmem %s1829_s7, 5120  ;;  %s1688_s6 = smov [#allocation2]  }
  0x43   : > { %p1583_p12 = scmp.ne.s32.totalorder %s1829_s7, %s1582_s27  ;;  %s1587_s9 = sshll.u32 %s1688_s6, 4  ;;  %s1588_s9 = int_to_ptr.vmem [resolvable:$false] %s1587_s9 }
  0x44   : > { %s1589_s21 = scalar_lea.vmem %s1588_s9, 10240  ;;  %p1590_p5 = scmp.lt.s32.totalorder %s1829_s7, %s1588_s9 }
  0x45   : > { %p1585_p13 = pnand %p1583_p12, %p1569_p3  ;;  %p1591_p9 = scmp.lt.s32.totalorder %s1589_s21, %s1582_s27 }
  0x47   : > { %p1586_p0 = pneg %p1585_p13  ;;  %p1592_p1 = por %p1591_p9, %p1590_p5 }
  0x49   : > { %p1593_p2 = pnand %p1592_p1, %p1586_p0 }
  0x4b   : > { %1596 = shalt.err (!%p1593_p2)
}
  0x4c   : > { %s1689_s18 = smov 256   ;;  %s1690_s19 = smov 16  }
  0x4d   : > { %1473 = dma.hbm_to_vmem [thread:$0]  (!%p1820_p11), %s1827_s10, 5120, %s1829_s7, %s1831_s11, %s1689_s18, %s1689_s18, %s1690_s19  }
  0x4e   : > { %p2271_p3 = scmp.ne.s32.totalorder %s2266_s24, 0 }
  0x4f   : > { %s1862_s25 = sand.u32 (!%p2271_p3), 1, %s1667_s13   ;;  %p2272_p7 = scmp.ne.s32.totalorder (!%p2271_p3), %s2264_s22, 0 }
  0x50   : > { %185 = sbr.rel (%p2271_p3) target bundleno = 473 (0x1d9), region = 32  ;;  %s188_s4 = scalar_lea.sflag (!%p2271_p3), [#allocation3], %s1862_s25 }
  0x51   : > { %s1457_s30 = smul.u32 (!%p2271_p3), 320, %s1862_s25 }
  0x53   : > { %s1866_s26 = scalar_lea.vmem (!%p2271_p3), [#allocation2], %s1457_s30 }
  0x57   : > { %1650 = dma.done.wait (%p2272_p7), %s188_s4, 5120  }
  0x58   : > { %1652 = vsyncadd (%p2272_p7), %s188_s4, 4294962176  ;;  %p2273_p11 = scmp.ne.s32.totalorder %s2262_s20, 0 }
  0x5a   : > { %1654 = dma.done.wait (%p2273_p11), [#allocation6], 10368  }
  0x5b   : > { %1656 = vsyncadd (%p2273_p11), [#allocation6], 4294956928  ;;  %v1691_v0 = vmov 0.0|0.0   ;;  %v319_v1 = vld [vmem:[#allocation5 + $0xd8] sm:$0xff]  ;;  %v320_v2 = vld [vmem:[#allocation5 + $0xe0] sm:$0xff]  ;;  %vm346_vm0 = vcmask 719872  }
  0x5c   : > { %1310 = vmatprep.subr.bf16.mxu0 %v1691_v0  ;;  %1349 = vmatprep.subr.bf16.mxu1 %v1691_v0  ;;  %v255_v3 = vld [vmem:[#allocation5] sm:$0xff]  ;;  %v1311_v4 = vpack.c.bf16 %v320_v2, %v319_v1  ;;  %v256_v5 = vld [vmem:[#allocation5 + $0x8] sm:$0xff]  ;;  %v322_v7 = vld [vmem:[#allocation5 + $0xf0] sm:$0xff]  ;;  %s1190_s24 = sshll.u32 %s1862_s25, 7  ;;  %s1309_s8 = sshll.u32 %s1675_s15, 11 }
  0x5d   : > { %v321_v6 = vld [vmem:[#allocation5 + $0xe8] sm:$0xff]  ;;  %v1350_v8 = vpack.c.bf16 %v256_v5, %v255_v3  ;;  %v257_v9 = vld [vmem:[#allocation5 + $0x10] sm:$0xff]  ;;  %v258_v10 = vld [vmem:[#allocation5 + $0x18] sm:$0xff]  ;;  %s2155_s7 = scalar_lea.vmem [#allocation7], %s1190_s24  ;;  %s2201_s6 = scalar_lea.hbm %s2257_s3, %s1309_s8 }
  0x5e   : > { %1312 = vmatpush1.bf16.msra.mxu0 %v1311_v4  ;;  %v1314_v11 = vpack.c.bf16 %v322_v7, %v321_v6  ;;  %v1353_v12 = vpack.c.bf16 %v258_v10, %v257_v9  ;;  %v323_v13 = vld [vmem:[#allocation5 + $0xf8] sm:$0xff]  ;;  %v324_v14 = vld [vmem:[#allocation5 + $0x100] sm:$0xff]  ;;  %v260_v16 = vld [vmem:[#allocation5 + $0x28] sm:$0xff]  ;;  %s1078_s10 = sshll.u32 %s2155_s7, 4  ;;  %s1062_s15 = scalar_lea.sflag [#allocation4], %s1862_s25  ;;  %s2203_s10 = int_to_ptr.vmem [resolvable:$true] %s1078_s10 }
  0x5f   : > { %1351 = vmatpush1.bf16.msra.mxu1 %v1350_v8  ;;  %1313 = vmatprep.subr.bf16.mxu0 %v1691_v0  ;;  %v259_v15 = vld [vmem:[#allocation5 + $0x20] sm:$0xff]  ;;  %v1317_v17 = vpack.c.bf16 %v324_v14, %v323_v13  ;;  %v325_v19 = vld [vmem:[#allocation5 + $0x108] sm:$0xff]  ;;  %v326_v20 = vld [vmem:[#allocation5 + $0x110] sm:$0xff]  ;;  %s1597_s9 = scalar_lea.vmem %s2203_s10, 2048  ;;  %s1693_s21 = smov [#allocation7]  }
  0x60   : > { %1352 = vmatprep.subr.bf16.mxu1 %v1691_v0  ;;  %v1356_v18 = vpack.c.bf16 %v260_v16, %v259_v15  ;;  %v261_v21 = vld [vmem:[#allocation5 + $0x30] sm:$0xff]  ;;  %v262_v22 = vld [vmem:[#allocation5 + $0x38] sm:$0xff]  ;;  %v1320_v23 = vpack.c.bf16 %v326_v20, %v325_v19  ;;  %v328_v26 = vld [vmem:[#allocation5 + $0x120] sm:$0xff]  ;;  %v1692_v20 = vmov 0.0   ;;  %p1598_p4 = scmp.ne.s32.totalorder %s2203_s10, %s1597_s9  ;;  %s1601_s18 = sshll.u32 %s1693_s21, 4  ;;  %s1602_s18 = int_to_ptr.vmem [resolvable:$false] %s1601_s18 }
  0x61   : > { %v1359_v24 = vpack.c.bf16 %v262_v22, %v261_v21  ;;  %v327_v25 = vld [vmem:[#allocation5 + $0x118] sm:$0xff]  ;;  %v263_v27 = vld [vmem:[#allocation5 + $0x40] sm:$0xff]  ;;  %v264_v28 = vld [vmem:[#allocation5 + $0x48] sm:$0xff]  ;;  %s1603_s19 = scalar_lea.vmem %s1602_s18, 4096  ;;  %p1604_p12 = scmp.lt.s32.totalorder %s2203_s10, %s1602_s18 }
  0x62   : > { %1315 = vmatpush1.bf16.msra.mxu0 %v1314_v11  ;;  %v1323_v29 = vpack.c.bf16 %v328_v26, %v327_v25  ;;  %v1362_v30 = vpack.c.bf16 %v264_v28, %v263_v27  ;;  %v329_v31 = vld [vmem:[#allocation5 + $0x128] sm:$0xff]  ;;  %v330_v32 = vld [vmem:[#allocation5 + $0x130] sm:$0xff]  ;;  %v266_v34 = vld [vmem:[#allocation5 + $0x58] sm:$0xff]  ;;  %p1599_p6 = pnand %p1598_p4, %p1808_p10  ;;  %p1605_p13 = scmp.lt.s32.totalorder %s1603_s19, %s1597_s9 }
  0x63   : > { %1354 = vmatpush1.bf16.msra.mxu1 %v1353_v12  ;;  %1316 = vmatprep.subr.bf16.mxu0 %v1691_v0  ;;  %v265_v33 = vld [vmem:[#allocation5 + $0x50] sm:$0xff]  ;;  %v1887_v35 = vld [vmem:[%s1866_s26 + $0x28] sm:$0xff]  ;;  %v1326_v37 = vpack.c.bf16 %v330_v32, %v329_v31  ;;  %v331_v39 = vld [vmem:[#allocation5 + $0x138] sm:$0xff] }
  0x64   : > { %1355 = vmatprep.subr.bf16.mxu1 %v1691_v0  ;;  %1223 = vmatprep.mubr.msk.f32.mxu0 %vm346_vm0, %v1887_v35  ;;  %v224_v36 = vld [vmem:[%s1866_s26 + $0x8] sm:$0xff]  ;;  %v1365_v38 = vpack.c.bf16 %v266_v34, %v265_v33  ;;  %v332_v40 = vld [vmem:[#allocation5 + $0x140] sm:$0xff]  ;;  %v334_v46 = vld [vmem:[#allocation5 + $0x150] sm:$0xff]  ;;  %p1600_p8 = pneg %p1599_p6  ;;  %p1606_p0 = por %p1605_p13, %p1604_p12 }
  0x65   : > { %1239 = vmatprep.mubr.msk.f32.mxu1 %vm346_vm0, %v224_v36  ;;  %v267_v41 = vld [vmem:[#allocation5 + $0x60] sm:$0xff]  ;;  %v268_v42 = vld [vmem:[#allocation5 + $0x68] sm:$0xff]  ;;  %v1329_v43 = vpack.c.bf16 %v332_v40, %v331_v39  ;;  %v269_v47 = vld [vmem:[#allocation5 + $0x70] sm:$0xff] }
  0x66   : > { %1318 = vmatpush1.bf16.msra.mxu0 %v1317_v17  ;;  %v1368_v44 = vpack.c.bf16 %v268_v42, %v267_v41  ;;  %v333_v45 = vld [vmem:[#allocation5 + $0x148] sm:$0xff]  ;;  %v270_v48 = vld [vmem:[#allocation5 + $0x78] sm:$0xff]  ;;  %v336_v52 = vld [vmem:[#allocation5 + $0x160] sm:$0xff]  ;;  %p1607_p5 = pnand %p1606_p0, %p1600_p8 }
  0x67   : > { %1357 = vmatpush1.bf16.msra.mxu1 %v1356_v18  ;;  %1319 = vmatprep.subr.bf16.mxu0 %v1691_v0  ;;  %v1332_v49 = vpack.c.bf16 %v334_v46, %v333_v45  ;;  %v1371_v50 = vpack.c.bf16 %v270_v48, %v269_v47  ;;  %v335_v51 = vld [vmem:[#allocation5 + $0x158] sm:$0xff]  ;;  %v271_v53 = vld [vmem:[#allocation5 + $0x80] sm:$0xff]  ;;  %v272_v54 = vld [vmem:[#allocation5 + $0x88] sm:$0xff] }
  0x68   : > { %1358 = vmatprep.subr.bf16.mxu1 %v1691_v0  ;;  %v1335_v55 = vpack.c.bf16 %v336_v52, %v335_v51  ;;  %v1374_v56 = vpack.c.bf16 %v272_v54, %v271_v53  ;;  %v337_v57 = vld [vmem:[#allocation5 + $0x168] sm:$0xff]  ;;  %v338_v58 = vld [vmem:[#allocation5 + $0x170] sm:$0xff]  ;;  %v274_v60 = vld [vmem:[#allocation5 + $0x98] sm:$0xff] }
  0x69   : > { %v273_v59 = vld [vmem:[#allocation5 + $0x90] sm:$0xff]  ;;  %v1338_v61 = vpack.c.bf16 %v338_v58, %v337_v57  ;;  %v339_v63 = vld [vmem:[#allocation5 + $0x178] sm:$0xff]  ;;  %v340_v1 = vld [vmem:[#allocation5 + $0x180] sm:$0xff] }
  0x6a   : > { %1321 = vmatpush1.bf16.msra.mxu0 %v1320_v23  ;;  %v1377_v62 = vpack.c.bf16 %v274_v60, %v273_v59  ;;  %v275_v2 = vld [vmem:[#allocation5 + $0xa0] sm:$0xff]  ;;  %v276_v3 = vld [vmem:[#allocation5 + $0xa8] sm:$0xff]  ;;  %v1341_v4 = vpack.c.bf16 %v340_v1, %v339_v63  ;;  %v342_v7 = vld [vmem:[#allocation5 + $0x190] sm:$0xff] }
  0x6b   : > { %1360 = vmatpush1.bf16.msra.mxu1 %v1359_v24  ;;  %1322 = vmatprep.subr.bf16.mxu0 %v1691_v0  ;;  %v1380_v5 = vpack.c.bf16 %v276_v3, %v275_v2  ;;  %v341_v6 = vld [vmem:[#allocation5 + $0x188] sm:$0xff]  ;;  %v277_v8 = vld [vmem:[#allocation5 + $0xb0] sm:$0xff]  ;;  %v278_v9 = vld [vmem:[#allocation5 + $0xb8] sm:$0xff] }
  0x6c   : > { %1361 = vmatprep.subr.bf16.mxu1 %v1691_v0  ;;  %v1344_v10 = vpack.c.bf16 %v342_v7, %v341_v6  ;;  %v1383_v11 = vpack.c.bf16 %v278_v9, %v277_v8  ;;  %v343_v12 = vld [vmem:[#allocation5 + $0x198] sm:$0xff]  ;;  %v344_v13 = vld [vmem:[#allocation5 + $0x1a0] sm:$0xff]  ;;  %v280_v15 = vld [vmem:[#allocation5 + $0xc8] sm:$0xff] }
  0x6d   : > { %v279_v14 = vld [vmem:[#allocation5 + $0xc0] sm:$0xff]  ;;  %v1347_v16 = vpack.c.bf16 %v344_v13, %v343_v12  ;;  %v770_v18 = vld [vmem:[#allocation5 + $0x1b0] sm:$0xff]  ;;  %v771_v19 = vld [vmem:[#allocation5 + $0x1b8] sm:$0xff] }
  0x6e   : > { %1324 = vmatpush1.bf16.msra.mxu0 %v1323_v29  ;;  %v1386_v17 = vpack.c.bf16 %v280_v15, %v279_v14  ;;  %v345_v21 = vld [vmem:[#allocation5 + $0x1a8] sm:$0xff]  ;;  %v281_v22 = vld [vmem:[#allocation5 + $0xd0] sm:$0xff]  ;;  %v1191_v23 = vld [vmem:[%s1866_s26 + $0x20] sm:$0xff]  ;;  %v1389_v25 = vpack.c.bf16 %v771_v19, %v770_v18 }
  0x6f   : > { %1363 = vmatpush1.bf16.msra.mxu1 %v1362_v30  ;;  %1325 = vmatprep.subr.bf16.mxu0 %v1691_v0  ;;  %v223_v24 = vld [vmem:[%s1866_s26] sm:$0xff]  ;;  %v773_v27 = vld [vmem:[#allocation5 + $0x1c8] sm:$0xff]  ;;  %v1194_v28 = vld [vmem:[%s1866_s26 + $0x38] sm:$0xff] }
  0x70   : > { %1364 = vmatprep.subr.bf16.mxu1 %v1691_v0  ;;  %v772_v26 = vld [vmem:[#allocation5 + $0x1c0] sm:$0xff]  ;;  %v226_v29 = vld [vmem:[%s1866_s26 + $0x18] sm:$0xff]  ;;  %v1193_v30 = vld [vmem:[%s1866_s26 + $0x30] sm:$0xff] }
  0x71   : > { %v225_v31 = vld [vmem:[%s1866_s26 + $0x10] sm:$0xff]  ;;  %v1392_v32 = vpack.c.bf16 %v773_v27, %v772_v26  ;;  %v1922_v33 = vld [vmem:[%s1866_s26 + $0x48] sm:$0xff]  ;;  %v775_v36 = vld [vmem:[#allocation5 + $0x1d8] sm:$0xff] }
  0x72   : > { %1327 = vmatpush1.bf16.msra.mxu0 %v1326_v37  ;;  %v774_v34 = vld [vmem:[#allocation5 + $0x1d0] sm:$0xff]  ;;  %v1926_v37 = vld [vmem:[%s1866_s26 + $0x40] sm:$0xff]  ;;  %v777_v41 = vld [vmem:[#allocation5 + $0x1e8] sm:$0xff] }
  0x73   : > { %1366 = vmatpush1.bf16.msra.mxu1 %v1365_v38  ;;  %1328 = vmatprep.subr.bf16.mxu0 %v1691_v0  ;;  %v1932_v38 = vld [vmem:[%s1866_s26 + $0x58] sm:$0xff]  ;;  %v1395_v39 = vpack.c.bf16 %v775_v36, %v774_v34  ;;  %v776_v40 = vld [vmem:[#allocation5 + $0x1e0] sm:$0xff]  ;;  %v1939_v42 = vld [vmem:[%s1866_s26 + $0x50] sm:$0xff] }
  0x74   : > { %1367 = vmatprep.subr.bf16.mxu1 %v1691_v0  ;;  %v779_v45 = vld [vmem:[#allocation5 + $0x1f8] sm:$0xff]  ;;  %v1951_v46 = vld [vmem:[%s1866_s26 + $0x60] sm:$0xff]  ;;  %v1966_v51 = vld [vmem:[%s1866_s26 + $0x70] sm:$0xff] }
  0x75   : > { %v1957_v47 = vld [vmem:[%s1866_s26 + $0x78] sm:$0xff]  ;;  %v1972_v52 = vld [vmem:[%s1866_s26 + $0x88] sm:$0xff]  ;;  %v782_v54 = vld [vmem:[#allocation5 + $0x210] sm:$0xff] }
  0x76   : > { %1330 = vmatpush1.bf16.msra.mxu0 %v1329_v43  ;;  %v1398_v43 = vpack.c.bf16 %v777_v41, %v776_v40  ;;  %v1986_v57 = vld [vmem:[%s1866_s26 + $0x98] sm:$0xff]  ;;  %v784_v59 = vld [vmem:[#allocation5 + $0x220] sm:$0xff]  ;;  %v785_v60 = vld [vmem:[#allocation5 + $0x228] sm:$0xff] }
  0x77   : > { %1369 = vmatpush1.bf16.msra.mxu1 %v1368_v44  ;;  %1331 = vmatprep.subr.bf16.mxu0 %v1691_v0  ;;  %v778_v44 = vld [vmem:[#allocation5 + $0x1f0] sm:$0xff]  ;;  %v1410_v63 = vpack.c.bf16 %v785_v60, %v784_v59  ;;  %v787_v2 = vld [vmem:[#allocation5 + $0x238] sm:$0xff]  ;;  %v2008_v3 = vld [vmem:[%s1866_s26 + $0xa0] sm:$0xff] }
  0x78   : > { %1370 = vmatprep.subr.bf16.mxu1 %v1691_v0  ;;  %v1401_v48 = vpack.c.bf16 %v779_v45, %v778_v44  ;;  %v786_v1 = vld [vmem:[#allocation5 + $0x230] sm:$0xff]  ;;  %v788_v6 = vld [vmem:[#allocation5 + $0x240] sm:$0xff]  ;;  %v789_v7 = vld [vmem:[#allocation5 + $0x248] sm:$0xff] }
  0x79   : > { %v2022_v8 = vld [vmem:[%s1866_s26 + $0xb0] sm:$0xff]  ;;  %v2028_v9 = vld [vmem:[%s1866_s26 + $0xc8] sm:$0xff]  ;;  %v791_v12 = vld [vmem:[#allocation5 + $0x258] sm:$0xff] }
  0x7a   : > { %1333 = vmatpush1.bf16.msra.mxu0 %v1332_v49  ;;  %v780_v49 = vld [vmem:[#allocation5 + $0x200] sm:$0xff]  ;;  %v2042_v14 = vld [vmem:[%s1866_s26 + $0xd8] sm:$0xff]  ;;  %v1213_v18 = vld [vmem:[%s1866_s26 + $0xd0] sm:$0xff] }
  0x7b   : > { %1372 = vmatpush1.bf16.msra.mxu1 %v1371_v50  ;;  %1334 = vmatprep.subr.bf16.mxu0 %v1691_v0  ;;  %v781_v50 = vld [vmem:[#allocation5 + $0x208] sm:$0xff]  ;;  %v2036_v13 = vld [vmem:[%s1866_s26 + $0xc0] sm:$0xff]  ;;  %v1217_v27 = vld [vmem:[%s1866_s26 + $0xf0] sm:$0xff] }
  0x7c   : > { %1373 = vmatprep.subr.bf16.mxu1 %v1691_v0  ;;  %v1404_v53 = vpack.c.bf16 %v781_v50, %v780_v49  ;;  %v1216_v19 = vld [vmem:[%s1866_s26 + $0xe8] sm:$0xff]  ;;  %v1285_v34 = vld [vmem:[%s1866_s26 + $0x130] sm:$0xff] }
  0x7e   : > { %1336 = vmatpush1.bf16.msra.mxu0 %v1335_v55  ;;  %v783_v55 = vld [vmem:[#allocation5 + $0x218] sm:$0xff] }
  0x7f   : > { %1375 = vmatpush1.bf16.msra.mxu1 %v1374_v56  ;;  %1337 = vmatprep.subr.bf16.mxu0 %v1691_v0  ;;  %v1980_v56 = vld [vmem:[%s1866_s26 + $0x80] sm:$0xff]  ;;  %v1407_v58 = vpack.c.bf16 %v783_v55, %v782_v54 }
  0x80   : > { %1376 = vmatprep.subr.bf16.mxu1 %v1691_v0 }
  0x82   : > { %1339 = vmatpush1.bf16.msra.mxu0 %v1338_v61  ;;  %v1994_v61 = vld [vmem:[%s1866_s26 + $0x90] sm:$0xff] }
  0x83   : > { %1378 = vmatpush1.bf16.msra.mxu1 %v1377_v62  ;;  %1340 = vmatprep.subr.bf16.mxu0 %v1691_v0  ;;  %v2000_v62 = vld [vmem:[%s1866_s26 + $0xa8] sm:$0xff] }
  0x84   : > { %1379 = vmatprep.subr.bf16.mxu1 %v1691_v0 }
  0x86   : > { %1342 = vmatpush1.bf16.msra.mxu0 %v1341_v4  ;;  %v2014_v4 = vld [vmem:[%s1866_s26 + $0xb8] sm:$0xff] }
  0x87   : > { %1381 = vmatpush1.bf16.msra.mxu1 %v1380_v5  ;;  %1343 = vmatprep.subr.bf16.mxu0 %v1691_v0  ;;  %v1413_v5 = vpack.c.bf16 %v787_v2, %v786_v1 }
  0x88   : > { %1382 = vmatprep.subr.bf16.mxu1 %v1691_v0 }
  0x8a   : > { %1345 = vmatpush1.bf16.msra.mxu0 %v1344_v10  ;;  %v1416_v10 = vpack.c.bf16 %v789_v7, %v788_v6 }
  0x8b   : > { %1384 = vmatpush1.bf16.msra.mxu1 %v1383_v11  ;;  %1346 = vmatprep.subr.bf16.mxu0 %v1691_v0  ;;  %v790_v11 = vld [vmem:[#allocation5 + $0x250] sm:$0xff] }
  0x8c   : > { %1385 = vmatprep.subr.bf16.mxu1 %v1691_v0  ;;  %v1419_v15 = vpack.c.bf16 %v791_v12, %v790_v11 }
  0x8e   : > { %1348 = vmatpush1.bf16.msra.mxu0 %v1347_v16  ;;  %v792_v16 = vld [vmem:[#allocation5 + $0x260] sm:$0xff] }
  0x8f   : > { %1387 = vmatpush1.bf16.msra.mxu1 %v1386_v17  ;;  %447 = vmatprep.subr.mxu0 %v1692_v20  ;;  %v793_v17 = vld [vmem:[#allocation5 + $0x268] sm:$0xff] }
  0x90   : > { %640 = vmatprep.subr.mxu1 %v1692_v20 }
  0x92   : > { %448 = vmatpush1.msra.mxu0 %v345_v21  ;;  %v1422_v21 = vpack.c.bf16 %v793_v17, %v792_v16 }
  0x93   : > { %641 = vmatpush1.msra.mxu1 %v281_v22  ;;  %460 = vmatmul.mubr.f32.vlgmr.msra.gmra.mrb[0].mxu0 %v1191_v23  ;;  %v794_v22 = vld [vmem:[#allocation5 + $0x270] sm:$0xff] }
  0x94   : > { %653 = vmatmul.mubr.f32.vlgmr.msra.gmra.mrb[0].mxu1 %v223_v24  ;;  %1388 = vmatprep.subr.bf16.mxu0 %v1691_v0  ;;  %v1215_v24 = vld [vmem:[%s1866_s26 + $0xe0] sm:$0xff] }
  0x95   : > { %1427 = vmatprep.subr.bf16.mxu1 %v1691_v0  ;;  %1390 = vmatpush1.bf16.msra.mxu0 %v1389_v25 }
  0x96   : > { %1441 = vmatpush1.bf16.msra.mxu1 %v1389_v25  ;;  %1224 = vmatprep.mubr.msk.f32.mxu0 %vm346_vm0, %v1194_v28  ;;  %v1218_v25 = vld [vmem:[%s1866_s26 + $0xf8] sm:$0xff] }
  0x97   : > { %1240 = vmatprep.mubr.msk.f32.mxu1 %vm346_vm0, %v226_v29  ;;  %465 = vmatmul.mubr.f32.gmra.mrb[2].mxu0 %v1193_v30  ;;  %v796_v29 = vld [vmem:[#allocation5 + $0x280] sm:$0xff] }
  0x98   : > { %658 = vmatmul.mubr.f32.gmra.mrb[2].mxu1 %v225_v31  ;;  %1391 = vmatprep.subr.bf16.mxu0 %v1691_v0  ;;  %v1222_v31 = vld [vmem:[%s1866_s26 + $0x118] sm:$0xff] }
  0x99   : > { %1428 = vmatprep.subr.bf16.mxu1 %v1691_v0  ;;  %1393 = vmatpush1.bf16.msra.mxu0 %v1392_v32 }
  0x9a   : > { %1442 = vmatpush1.bf16.msra.mxu1 %v1392_v32  ;;  %1225 = vmatprep.mubr.msk.f32.mxu0 %vm346_vm0, %v1922_v33  ;;  %v1283_v32 = vld [vmem:[%s1866_s26 + $0x120] sm:$0xff] }
  0x9b   : > { %1241 = vmatprep.mubr.msk.f32.mxu1 %vm346_vm0, %v1887_v35  ;;  %470 = vmatmul.mubr.f32.gmra.mrb[4].mxu0 %v1926_v37  ;;  %v1946_v35 = vld [vmem:[%s1866_s26 + $0x68] sm:$0xff] }
  0x9c   : > { %663 = vmatmul.mubr.f32.gmra.mrb[4].mxu1 %v1191_v23  ;;  %1394 = vmatprep.subr.bf16.mxu0 %v1691_v0  ;;  %v795_v23 = vld [vmem:[#allocation5 + $0x278] sm:$0xff] }
  0x9d   : > { %1429 = vmatprep.subr.bf16.mxu1 %v1691_v0  ;;  %1226 = vmatprep.mubr.msk.f32.mxu0 %vm346_vm0, %v1932_v38  ;;  %v1425_v26 = vpack.c.bf16 %v795_v23, %v794_v22 }
  0x9e   : > { %1242 = vmatprep.mubr.msk.f32.mxu1 %vm346_vm0, %v1194_v28  ;;  %1396 = vmatpush1.bf16.msra.mxu0 %v1395_v39  ;;  %v1220_v28 = vld [vmem:[%s1866_s26 + $0x108] sm:$0xff] }
  0x9f   : > { %1443 = vmatpush1.bf16.msra.mxu1 %v1395_v39  ;;  %475 = vmatmul.mubr.f32.gmra.mrb[6].mxu0 %v1939_v42 }
  0xa0   : > { %668 = vmatmul.mubr.f32.gmra.mrb[6].mxu1 %v1193_v30  ;;  %1397 = vmatprep.subr.bf16.mxu0 %v1691_v0  ;;  %v1219_v30 = vld [vmem:[%s1866_s26 + $0x100] sm:$0xff] }
  0xa1   : > { %1430 = vmatprep.subr.bf16.mxu1 %v1691_v0  ;;  %1227 = vmatprep.mubr.msk.f32.mxu0 %vm346_vm0, %v1946_v35 }
  0xa2   : > { %1243 = vmatprep.mubr.msk.f32.mxu1 %vm346_vm0, %v1922_v33  ;;  %1399 = vmatpush1.bf16.msra.mxu0 %v1398_v43 }
  0xa3   : > { %1444 = vmatpush1.bf16.msra.mxu1 %v1398_v43  ;;  %480 = vmatmul.mubr.f32.gmra.mrb[8].mxu0 %v1951_v46 }
  0xa4   : > { %673 = vmatmul.mubr.f32.gmra.mrb[8].mxu1 %v1926_v37  ;;  %1228 = vmatprep.mubr.msk.f32.mxu0 %vm346_vm0, %v1957_v47 }
  0xa5   : > { %1244 = vmatprep.mubr.msk.f32.mxu1 %vm346_vm0, %v1932_v38  ;;  %1400 = vmatprep.subr.bf16.mxu0 %v1691_v0 }
  0xa6   : > { %1431 = vmatprep.subr.bf16.mxu1 %v1691_v0  ;;  %1402 = vmatpush1.bf16.msra.mxu0 %v1401_v48 }
  0xa7   : > { %485 = vmatmul.mubr.f32.gmra.mrb[10].mxu0 %v1966_v51  ;;  %1445 = vmatpush1.bf16.msra.mxu1 %v1401_v48 }
  0xa8   : > { %678 = vmatmul.mubr.f32.gmra.mrb[10].mxu1 %v1939_v42  ;;  %1229 = vmatprep.mubr.msk.f32.mxu0 %vm346_vm0, %v1972_v52 }
  0xa9   : > { %1245 = vmatprep.mubr.msk.f32.mxu1 %vm346_vm0, %v1946_v35  ;;  %1403 = vmatprep.subr.bf16.mxu0 %v1691_v0 }
  0xaa   : > { %1432 = vmatprep.subr.bf16.mxu1 %v1691_v0  ;;  %1405 = vmatpush1.bf16.msra.mxu0 %v1404_v53 }
  0xab   : > { %490 = vmatmul.mubr.f32.gmra.mrb[12].mxu0 %v1980_v56  ;;  %1446 = vmatpush1.bf16.msra.mxu1 %v1404_v53 }
  0xac   : > { %683 = vmatmul.mubr.f32.gmra.mrb[12].mxu1 %v1951_v46  ;;  %1230 = vmatprep.mubr.msk.f32.mxu0 %vm346_vm0, %v1986_v57 }
  0xad   : > { %1246 = vmatprep.mubr.msk.f32.mxu1 %vm346_vm0, %v1957_v47  ;;  %1406 = vmatprep.subr.bf16.mxu0 %v1691_v0 }
  0xae   : > { %1433 = vmatprep.subr.bf16.mxu1 %v1691_v0  ;;  %1408 = vmatpush1.bf16.msra.mxu0 %v1407_v58 }
  0xaf   : > { %495 = vmatmul.mubr.f32.gmra.mrb[14].mxu0 %v1994_v61  ;;  %1447 = vmatpush1.bf16.msra.mxu1 %v1407_v58 }
  0xb0   : > { %688 = vmatmul.mubr.f32.gmra.mrb[14].mxu1 %v1966_v51  ;;  %1231 = vmatprep.mubr.msk.f32.mxu0 %vm346_vm0, %v2000_v62 }
  0xb1   : > { %1247 = vmatprep.mubr.msk.f32.mxu1 %vm346_vm0, %v1972_v52  ;;  %1409 = vmatprep.subr.bf16.mxu0 %v1691_v0 }
  0xb2   : > { %1434 = vmatprep.subr.bf16.mxu1 %v1691_v0  ;;  %1411 = vmatpush1.bf16.msra.mxu0 %v1410_v63 }
  0xb3   : > { %500 = vmatmul.mubr.f32.gmra.mrb[16].mxu0 %v2008_v3  ;;  %1448 = vmatpush1.bf16.msra.mxu1 %v1410_v63 }
  0xb4   : > { %693 = vmatmul.mubr.f32.gmra.mrb[16].mxu1 %v1980_v56  ;;  %1232 = vmatprep.mubr.msk.f32.mxu0 %vm346_vm0, %v2014_v4 }
  0xb5   : > { %1248 = vmatprep.mubr.msk.f32.mxu1 %vm346_vm0, %v1986_v57  ;;  %1412 = vmatprep.subr.bf16.mxu0 %v1691_v0 }
  0xb6   : > { %1435 = vmatprep.subr.bf16.mxu1 %v1691_v0  ;;  %1414 = vmatpush1.bf16.msra.mxu0 %v1413_v5 }
  0xb7   : > { %505 = vmatmul.mubr.f32.gmra.mrb[18].mxu0 %v2022_v8  ;;  %1449 = vmatpush1.bf16.msra.mxu1 %v1413_v5 }
  0xb8   : > { %698 = vmatmul.mubr.f32.gmra.mrb[18].mxu1 %v1994_v61  ;;  %1233 = vmatprep.mubr.msk.f32.mxu0 %vm346_vm0, %v2028_v9 }
  0xb9   : > { %1249 = vmatprep.mubr.msk.f32.mxu1 %vm346_vm0, %v2000_v62  ;;  %1415 = vmatprep.subr.bf16.mxu0 %v1691_v0 }
  0xba   : > { %1436 = vmatprep.subr.bf16.mxu1 %v1691_v0  ;;  %1417 = vmatpush1.bf16.msra.mxu0 %v1416_v10 }
  0xbb   : > { %510 = vmatmul.mubr.f32.gmra.mrb[20].mxu0 %v2036_v13  ;;  %1450 = vmatpush1.bf16.msra.mxu1 %v1416_v10 }
  0xbc   : > { %703 = vmatmul.mubr.f32.gmra.mrb[20].mxu1 %v2008_v3  ;;  %1234 = vmatprep.mubr.msk.f32.mxu0 %vm346_vm0, %v2042_v14 }
  0xbd   : > { %1250 = vmatprep.mubr.msk.f32.mxu1 %vm346_vm0, %v2014_v4  ;;  %1418 = vmatprep.subr.bf16.mxu0 %v1691_v0 }
  0xbe   : > { %1437 = vmatprep.subr.bf16.mxu1 %v1691_v0  ;;  %1420 = vmatpush1.bf16.msra.mxu0 %v1419_v15 }
  0xbf   : > { %515 = vmatmul.mubr.f32.gmra.mrb[22].mxu0 %v1213_v18  ;;  %1451 = vmatpush1.bf16.msra.mxu1 %v1419_v15 }
  0xc0   : > { %708 = vmatmul.mubr.f32.gmra.mrb[22].mxu1 %v2022_v8  ;;  %1235 = vmatprep.mubr.msk.f32.mxu0 %vm346_vm0, %v1216_v19 }
  0xc1   : > { %1251 = vmatprep.mubr.msk.f32.mxu1 %vm346_vm0, %v2028_v9  ;;  %1421 = vmatprep.subr.bf16.mxu0 %v1691_v0 }
  0xc2   : > { %1438 = vmatprep.subr.bf16.mxu1 %v1691_v0  ;;  %1423 = vmatpush1.bf16.msra.mxu0 %v1422_v21 }
  0xc3   : > { %520 = vmatmul.mubr.f32.gmra.mrb[24].mxu0 %v1215_v24  ;;  %1452 = vmatpush1.bf16.msra.mxu1 %v1422_v21 }
  0xc4   : > { %713 = vmatmul.mubr.f32.gmra.mrb[24].mxu1 %v2036_v13  ;;  %1236 = vmatprep.mubr.msk.f32.mxu0 %vm346_vm0, %v1218_v25 }
  0xc5   : > { %1252 = vmatprep.mubr.msk.f32.mxu1 %vm346_vm0, %v2042_v14  ;;  %1424 = vmatprep.subr.bf16.mxu0 %v1691_v0 }
  0xc6   : > { %1439 = vmatprep.subr.bf16.mxu1 %v1691_v0  ;;  %1426 = vmatpush1.bf16.msra.mxu0 %v1425_v26  ;;  %v1221_v0 = vld [vmem:[%s1866_s26 + $0x110] sm:$0xff] }
  0xc7   : > { %525 = vmatmul.mubr.f32.gmra.mrb[26].mxu0 %v1217_v27  ;;  %1453 = vmatpush1.bf16.msra.mxu1 %v1425_v26 }
  0xc8   : > { %718 = vmatmul.mubr.f32.gmra.mrb[26].mxu1 %v1213_v18  ;;  %1237 = vmatprep.mubr.msk.f32.mxu0 %vm346_vm0, %v1220_v28 }
  0xc9   : > { %1253 = vmatprep.mubr.msk.f32.mxu1 %vm346_vm0, %v1216_v19  ;;  %897 = vmatprep.subr.mxu0 %v1692_v20 }
  0xca   : > { %1440 = vmatprep.subr.mxu1 %v1692_v20  ;;  %898 = vmatpush1.msra.mxu0 %v796_v29  ;;  %v1284_v20 = vld [vmem:[%s1866_s26 + $0x128] sm:$0xff] }
  0xcb   : > { %530 = vmatmul.mubr.f32.gmra.mrb[28].mxu0 %v1219_v30  ;;  %1454 = vmatpush1.msra.mxu1 %v796_v29 }
  0xcc   : > { %723 = vmatmul.mubr.f32.gmra.mrb[28].mxu1 %v1215_v24  ;;  %1238 = vmatprep.mubr.msk.f32.mxu0 %vm346_vm0, %v1222_v31 }
  0xcd   : > { %1254 = vmatprep.mubr.msk.f32.mxu1 %vm346_vm0, %v1218_v25 }
  0xcf   : > { %535 = vmatmul.mubr.f32.gmra.mrb[30].mxu0 %v1221_v0 }
  0xd0   : > { %728 = vmatmul.mubr.f32.gmra.mrb[30].mxu1 %v1217_v27  ;;  %1287 = vmatprep.mubr.msk.f32.mxu0 %vm346_vm0, %v1922_v33  ;;  %v1286_v33 = vld [vmem:[%s1866_s26 + $0x138] sm:$0xff] }
  0xd1   : > { %1295 = vmatprep.mubr.msk.f32.mxu1 %vm346_vm0, %v2028_v9 }
  0xd3   : > { %910 = vmatmul.mubr.f32.vlgmr.msra.gmra.mrb[32].mxu0 %v1926_v37 }
  0xd4   : > { %950 = vmatmul.mubr.f32.vlgmr.msra.gmra.mrb[32].mxu1 %v2036_v13  ;;  %1288 = vmatprep.mubr.msk.f32.mxu0 %vm346_vm0, %v1932_v38 }
  0xd5   : > { %1296 = vmatprep.mubr.msk.f32.mxu1 %vm346_vm0, %v2042_v14 }
  0xd7   : > { %915 = vmatmul.mubr.f32.gmra.mrb[34].mxu0 %v1939_v42 }
  0xd8   : > { %955 = vmatmul.mubr.f32.gmra.mrb[34].mxu1 %v1213_v18  ;;  %1289 = vmatprep.mubr.msk.f32.mxu0 %vm346_vm0, %v1946_v35 }
  0xd9   : > { %1297 = vmatprep.mubr.msk.f32.mxu1 %vm346_vm0, %v1216_v19 }
  0xdb   : > { %920 = vmatmul.mubr.f32.gmra.mrb[36].mxu0 %v1951_v46 }
  0xdc   : > { %960 = vmatmul.mubr.f32.gmra.mrb[36].mxu1 %v1215_v24  ;;  %1290 = vmatprep.mubr.msk.f32.mxu0 %vm346_vm0, %v1957_v47 }
  0xdd   : > { %1298 = vmatprep.mubr.msk.f32.mxu1 %vm346_vm0, %v1218_v25 }
  0xdf   : > { %925 = vmatmul.mubr.f32.gmra.mrb[38].mxu0 %v1966_v51 }
  0xe0   : > { %965 = vmatmul.mubr.f32.gmra.mrb[38].mxu1 %v1217_v27  ;;  %1291 = vmatprep.mubr.msk.f32.mxu0 %vm346_vm0, %v1972_v52 }
  0xe1   : > { %1299 = vmatprep.mubr.msk.f32.mxu1 %vm346_vm0, %v1220_v28 }
  0xe3   : > { %930 = vmatmul.mubr.f32.gmra.mrb[40].mxu0 %v1980_v56 }
  0xe4   : > { %970 = vmatmul.mubr.f32.gmra.mrb[40].mxu1 %v1219_v30  ;;  %1292 = vmatprep.mubr.msk.f32.mxu0 %vm346_vm0, %v1986_v57 }
  0xe5   : > { %1300 = vmatprep.mubr.msk.f32.mxu1 %vm346_vm0, %v1222_v31 }
  0xe7   : > { %935 = vmatmul.mubr.f32.gmra.mrb[42].mxu0 %v1994_v61 }
  0xe8   : > { %975 = vmatmul.mubr.f32.gmra.mrb[42].mxu1 %v1221_v0  ;;  %1293 = vmatprep.mubr.msk.f32.mxu0 %vm346_vm0, %v2000_v62 }
  0xe9   : > { %1301 = vmatprep.mubr.msk.f32.mxu1 %vm346_vm0, %v1284_v20 }
  0xeb   : > { %940 = vmatmul.mubr.f32.gmra.mrb[44].mxu0 %v2008_v3 }
  0xec   : > { %980 = vmatmul.mubr.f32.gmra.mrb[44].mxu1 %v1283_v32  ;;  %1294 = vmatprep.mubr.msk.f32.mxu0 %vm346_vm0, %v2014_v4 }
  0xed   : > { %1302 = vmatprep.mubr.msk.f32.mxu1 %vm346_vm0, %v1286_v33 }
  0xef   : > { %945 = vmatmul.mubr.f32.gmra.mrb[46].mxu0 %v2022_v8 }
  0xf0   : > { %985 = vmatmul.mubr.f32.gmra.mrb[46].mxu1 %v1285_v34 }
 0x166   : > { %v461_v36 = vpop.f32.mrb[0].mxu0 }
 0x167   : > { %v654_v37 = vpop.f32.mrb[0].mxu1  ;;  %v463_v38 = vpop.f32.mrb[1].mxu0 }
 0x168   : > { %v2119_v39 = vadd.f32 %v654_v37, %v461_v36  ;;  %v656_v40 = vpop.f32.mrb[1].mxu1 }
 0x16a   : > { %v466_v41 = vpop.f32.mrb[2].mxu0 }
 0x16b   : > { %v659_v42 = vpop.f32.mrb[2].mxu1  ;;  %v468_v35 = vpop.f32.mrb[3].mxu0 }
 0x16c   : > { %v2121_v43 = vadd.f32 %v659_v42, %v466_v41  ;;  %v661_v44 = vpop.f32.mrb[3].mxu1 }
 0x16e   : > { %v471_v45 = vpop.f32.mrb[4].mxu0 }
 0x16f   : > { %v664_v46 = vpop.f32.mrb[4].mxu1  ;;  %v473_v47 = vpop.f32.mrb[5].mxu0 }
 0x170   : > { %v2123_v48 = vadd.f32 %v664_v46, %v471_v45  ;;  %v666_v49 = vpop.f32.mrb[5].mxu1 }
 0x172   : > { %v476_v50 = vpop.f32.mrb[6].mxu0 }
 0x173   : > { %v669_v51 = vpop.f32.mrb[6].mxu1  ;;  %v478_v52 = vpop.f32.mrb[7].mxu0 }
 0x174   : > { %v2125_v53 = vadd.f32 %v669_v51, %v476_v50  ;;  %v671_v54 = vpop.f32.mrb[7].mxu1 }
 0x176   : > { %v481_v55 = vpop.f32.mrb[8].mxu0 }
 0x177   : > { %v674_v56 = vpop.f32.mrb[8].mxu1  ;;  %v483_v57 = vpop.f32.mrb[9].mxu0 }
 0x178   : > { %v2127_v58 = vadd.f32 %v674_v56, %v481_v55  ;;  %v676_v59 = vpop.f32.mrb[9].mxu1  ;;  %v2148_v56 = vld [vmem:[%s2256_s2] ss:$0 sm:$0xff] }
 0x17a   : > { %v486_v60 = vpop.f32.mrb[10].mxu0 }
 0x17b   : > { %v679_v61 = vpop.f32.mrb[10].mxu1  ;;  %v488_v62 = vpop.f32.mrb[11].mxu0 }
 0x17c   : > { %v2129_v63 = vadd.f32 %v679_v61, %v486_v60  ;;  %v681_v1 = vpop.f32.mrb[11].mxu1 }
 0x17e   : > { %v491_v2 = vpop.f32.mrb[12].mxu0 }
 0x17f   : > { %v684_v3 = vpop.f32.mrb[12].mxu1  ;;  %v493_v4 = vpop.f32.mrb[13].mxu0 }
 0x180   : > { %v2131_v5 = vadd.f32 %v684_v3, %v491_v2  ;;  %v686_v6 = vpop.f32.mrb[13].mxu1 }
 0x182   : > { %v496_v7 = vpop.f32.mrb[14].mxu0 }
 0x183   : > { %v689_v8 = vpop.f32.mrb[14].mxu1  ;;  %v498_v9 = vpop.f32.mrb[15].mxu0 }
 0x184   : > { %v2133_v10 = vadd.f32 %v689_v8, %v496_v7  ;;  %v691_v11 = vpop.f32.mrb[15].mxu1 }
 0x186   : > { %v501_v12 = vpop.f32.mrb[16].mxu0 }
 0x187   : > { %v694_v13 = vpop.f32.mrb[16].mxu1  ;;  %v503_v14 = vpop.f32.mrb[17].mxu0 }
 0x188   : > { %v695_v15 = vadd.f32 %v694_v13, %v501_v12  ;;  %v696_v16 = vpop.f32.mrb[17].mxu1 }
 0x18a   : > { %v506_v17 = vpop.f32.mrb[18].mxu0 }
 0x18b   : > { %v699_v18 = vpop.f32.mrb[18].mxu1  ;;  %v508_v19 = vpop.f32.mrb[19].mxu0 }
 0x18c   : > { %v700_v21 = vadd.f32 %v699_v18, %v506_v17  ;;  %v701_v22 = vpop.f32.mrb[19].mxu1 }
 0x18e   : > { %v511_v23 = vpop.f32.mrb[20].mxu0 }
 0x18f   : > { %v704_v24 = vpop.f32.mrb[20].mxu1  ;;  %v513_v25 = vpop.f32.mrb[21].mxu0 }
 0x190   : > { %v705_v26 = vadd.f32 %v704_v24, %v511_v23  ;;  %v706_v27 = vpop.f32.mrb[21].mxu1 }
 0x192   : > { %v516_v28 = vpop.f32.mrb[22].mxu0 }
 0x193   : > { %v709_v29 = vpop.f32.mrb[22].mxu1  ;;  %v518_v30 = vpop.f32.mrb[23].mxu0 }
 0x194   : > { %v2135_v31 = vadd.f32 %v709_v29, %v516_v28  ;;  %v711_v0 = vpop.f32.mrb[23].mxu1 }
 0x196   : > { %v521_v20 = vpop.f32.mrb[24].mxu0 }
 0x197   : > { %v714_v32 = vpop.f32.mrb[24].mxu1  ;;  %v523_v33 = vpop.f32.mrb[25].mxu0 }
 0x198   : > { %v2137_v34 = vadd.f32 %v714_v32, %v521_v20  ;;  %v716_v36 = vpop.f32.mrb[25].mxu1 }
 0x19a   : > { %v526_v37 = vpop.f32.mrb[26].mxu0 }
 0x19b   : > { %v719_v38 = vpop.f32.mrb[26].mxu1  ;;  %v528_v40 = vpop.f32.mrb[27].mxu0 }
 0x19c   : > { %v2139_v41 = vadd.f32 %v719_v38, %v526_v37  ;;  %v721_v42 = vpop.f32.mrb[27].mxu1 }
 0x19e   : > { %v531_v35 = vpop.f32.mrb[28].mxu0 }
 0x19f   : > { %v724_v44 = vpop.f32.mrb[28].mxu1  ;;  %v533_v45 = vpop.f32.mrb[29].mxu0 }
 0x1a0   : > { %v2141_v46 = vadd.f32 %v724_v44, %v531_v35  ;;  %v726_v47 = vpop.f32.mrb[29].mxu1 }
 0x1a2   : > { %v536_v49 = vpop.f32.mrb[30].mxu0 }
 0x1a3   : > { %v729_v50 = vpop.f32.mrb[30].mxu1  ;;  %v538_v51 = vpop.f32.mrb[31].mxu0 }
 0x1a4   : > { %v2143_v52 = vadd.f32 %v729_v50, %v536_v49  ;;  %v731_v54 = vpop.f32.mrb[31].mxu1 }
 0x1a6   : > { %v911_v55 = vpop.f32.mrb[32].mxu0 }
 0x1a7   : > { %v990_v57 = vadd.f32 %v911_v55, %v2119_v39  ;;  %v951_v59 = vpop.f32.mrb[32].mxu1  ;;  %v913_v60 = vpop.f32.mrb[33].mxu0 }
 0x1a8   : > { %v998_v61 = vadd.f32 %v951_v59, %v695_v15  ;;  %v953_v62 = vpop.f32.mrb[33].mxu1 }
 0x1a9   : > { %v1013_v1 = vadd.f32 %v2148_v56, %v990_v57 }
 0x1aa   : > { %v1021_v2 = vadd.f32 %v2148_v56, %v998_v61  ;;  %v916_v3 = vpop.f32.mrb[34].mxu0 }
 0x1ab   : > { %v1029_v4 = vmax.f32 %v1013_v1, 0.0  ;;  %v991_v6 = vadd.f32 %v916_v3, %v2121_v43  ;;  %v956_v7 = vpop.f32.mrb[34].mxu1  ;;  %v918_v8 = vpop.f32.mrb[35].mxu0 }
 0x1ac   : > { %v1037_v9 = vmax.f32 %v1021_v2, 0.0  ;;  %v999_v11 = vadd.f32 %v956_v7, %v700_v21  ;;  %v958_v12 = vpop.f32.mrb[35].mxu1 }
 0x1ad   : > { %1045 = vst [vmem:[%s2155_s7] sm:$0xff] %v1029_v4  ;;  %v1014_v39 = vadd.f32 %v2148_v56, %v991_v6 }
 0x1ae   : > { %1053 = vst [vmem:[%s2155_s7 + $0x40] sm:$0xff] %v1037_v9  ;;  %v1022_v13 = vadd.f32 %v2148_v56, %v999_v11  ;;  %v921_v14 = vpop.f32.mrb[36].mxu0 }
 0x1af   : > { %v1030_v15 = vmax.f32 %v1014_v39, 0.0  ;;  %v992_v43 = vadd.f32 %v921_v14, %v2123_v48  ;;  %v961_v16 = vpop.f32.mrb[36].mxu1  ;;  %v923_v17 = vpop.f32.mrb[37].mxu0 }
 0x1b0   : > { %v1038_v18 = vmax.f32 %v1022_v13, 0.0  ;;  %v1000_v19 = vadd.f32 %v961_v16, %v705_v26  ;;  %v963_v21 = vpop.f32.mrb[37].mxu1 }
 0x1b1   : > { %1046 = vst [vmem:[%s2155_s7 + $0x8] sm:$0xff] %v1030_v15  ;;  %v1015_v22 = vadd.f32 %v2148_v56, %v992_v43 }
 0x1b2   : > { %1054 = vst [vmem:[%s2155_s7 + $0x48] sm:$0xff] %v1038_v18  ;;  %v1023_v23 = vadd.f32 %v2148_v56, %v1000_v19  ;;  %v926_v24 = vpop.f32.mrb[38].mxu0 }
 0x1b3   : > { %v1031_v25 = vmax.f32 %v1015_v22, 0.0  ;;  %v993_v27 = vadd.f32 %v926_v24, %v2125_v53  ;;  %v966_v28 = vpop.f32.mrb[38].mxu1  ;;  %v928_v29 = vpop.f32.mrb[39].mxu0 }
 0x1b4   : > { %v1039_v48 = vmax.f32 %v1023_v23, 0.0  ;;  %v1001_v30 = vadd.f32 %v966_v28, %v2135_v31  ;;  %v968_v26 = vpop.f32.mrb[39].mxu1 }
 0x1b5   : > { %1047 = vst [vmem:[%s2155_s7 + $0x10] sm:$0xff] %v1031_v25  ;;  %v1016_v0 = vadd.f32 %v2148_v56, %v993_v27 }
 0x1b6   : > { %1055 = vst [vmem:[%s2155_s7 + $0x50] sm:$0xff] %v1039_v48  ;;  %v1024_v20 = vadd.f32 %v2148_v56, %v1001_v30  ;;  %v931_v32 = vpop.f32.mrb[40].mxu0 }
 0x1b7   : > { %v1032_v33 = vmax.f32 %v1016_v0, 0.0  ;;  %v994_v36 = vadd.f32 %v931_v32, %v2127_v58  ;;  %v971_v37 = vpop.f32.mrb[40].mxu1  ;;  %v933_v53 = vpop.f32.mrb[41].mxu0 }
 0x1b8   : > { %v1040_v38 = vmax.f32 %v1024_v20, 0.0  ;;  %v1002_v40 = vadd.f32 %v971_v37, %v2137_v34  ;;  %v973_v31 = vpop.f32.mrb[41].mxu1 }
 0x1b9   : > { %1048 = vst [vmem:[%s2155_s7 + $0x18] sm:$0xff] %v1032_v33  ;;  %v1017_v42 = vadd.f32 %v2148_v56, %v994_v36 }
 0x1ba   : > { %1056 = vst [vmem:[%s2155_s7 + $0x58] sm:$0xff] %v1040_v38  ;;  %v1025_v35 = vadd.f32 %v2148_v56, %v1002_v40  ;;  %v936_v44 = vpop.f32.mrb[42].mxu0 }
 0x1bb   : > { %v1033_v45 = vmax.f32 %v1017_v42, 0.0  ;;  %v995_v47 = vadd.f32 %v936_v44, %v2129_v63  ;;  %v976_v49 = vpop.f32.mrb[42].mxu1  ;;  %v938_v58 = vpop.f32.mrb[43].mxu0 }
 0x1bc   : > { %v1041_v50 = vmax.f32 %v1025_v35, 0.0  ;;  %v1003_v51 = vadd.f32 %v976_v49, %v2139_v41  ;;  %v978_v34 = vpop.f32.mrb[43].mxu1 }
 0x1bd   : > { %1049 = vst [vmem:[%s2155_s7 + $0x20] sm:$0xff] %v1033_v45  ;;  %v1018_v54 = vadd.f32 %v2148_v56, %v995_v47 }
 0x1be   : > { %1057 = vst [vmem:[%s2155_s7 + $0x60] sm:$0xff] %v1041_v50  ;;  %v1026_v55 = vadd.f32 %v2148_v56, %v1003_v51  ;;  %v941_v57 = vpop.f32.mrb[44].mxu0 }
 0x1bf   : > { %v1034_v59 = vmax.f32 %v1018_v54, 0.0  ;;  %v996_v60 = vadd.f32 %v941_v57, %v2131_v5  ;;  %v981_v61 = vpop.f32.mrb[44].mxu1  ;;  %v943_v63 = vpop.f32.mrb[45].mxu0 }
 0x1c0   : > { %v1042_v62 = vmax.f32 %v1026_v55, 0.0  ;;  %v1004_v1 = vadd.f32 %v981_v61, %v2141_v46  ;;  %v983_v41 = vpop.f32.mrb[45].mxu1 }
 0x1c1   : > { %1050 = vst [vmem:[%s2155_s7 + $0x28] sm:$0xff] %v1034_v59  ;;  %v1019_v2 = vadd.f32 %v2148_v56, %v996_v60 }
 0x1c2   : > { %1058 = vst [vmem:[%s2155_s7 + $0x68] sm:$0xff] %v1042_v62  ;;  %v1027_v3 = vadd.f32 %v2148_v56, %v1004_v1  ;;  %v946_v4 = vpop.f32.mrb[46].mxu0 }
 0x1c3   : > { %v1035_v6 = vmax.f32 %v1019_v2, 0.0  ;;  %v997_v5 = vadd.f32 %v946_v4, %v2133_v10  ;;  %v986_v7 = vpop.f32.mrb[46].mxu1  ;;  %v948_v8 = vpop.f32.mrb[47].mxu0 }
 0x1c4   : > { %v1043_v9 = vmax.f32 %v1027_v3, 0.0  ;;  %v1005_v46 = vadd.f32 %v986_v7, %v2143_v52  ;;  %v988_v11 = vpop.f32.mrb[47].mxu1 }
 0x1c5   : > { %1051 = vst [vmem:[%s2155_s7 + $0x30] sm:$0xff] %v1035_v6  ;;  %v1020_v12 = vadd.f32 %v2148_v56, %v997_v5 }
 0x1c6   : > { %1059 = vst [vmem:[%s2155_s7 + $0x70] sm:$0xff] %v1043_v9  ;;  %v1028_v39 = vadd.f32 %v2148_v56, %v1005_v46 }
 0x1c7   : > { %v1036_v13 = vmax.f32 %v1020_v12, 0.0 }
 0x1c8   : > { %v1044_v10 = vmax.f32 %v1028_v39, 0.0 }
 0x1c9   : > { %1052 = vst [vmem:[%s2155_s7 + $0x38] sm:$0xff] %v1036_v13 }
 0x1ca   : > { %1060 = vst [vmem:[%s2155_s7 + $0x78] sm:$0xff] %v1044_v10 }
 0x1cb   : > { %1610 = shalt.err (!%p1607_p5)
}
 0x1cc   : > { %s1611_s30 = scalar_lea.hbm %s2201_s6, 2048  ;;  %s1615_s20 = scalar_lea.hbm %s2257_s3, 4096 }
 0x1cd   : > { %p1612_p9 = scmp.ne.s32.totalorder %s2201_s6, %s1611_s30  ;;  %p1616_p3 = scmp.lt.u32.totalorder %s2201_s6, %s2257_s3 }
 0x1ce   : > { %p1617_p7 = scmp.lt.u32.totalorder %s1615_s20, %s1611_s30  ;;  %p1619_p4 = scmp.lt.u32.totalorder %s1611_s30, %s2201_s6 }
 0x1cf   : > { %p1613_p1 = pnand %p1612_p9, %p1808_p10 }
 0x1d0   : > { %p1618_p11 = por %p1617_p7, %p1616_p3 }
 0x1d1   : > { %p1614_p2 = pneg %p1613_p1 }
 0x1d2   : > { %p1620_p6 = por %p1619_p4, %p1618_p11 }
 0x1d4   : > { %p1621_p8 = pnand %p1620_p6, %p1614_p2 }
 0x1d6   : > { %1624 = shalt.err (!%p1621_p8)
}
 0x1d7   : > { %s1694_s7 = smov 128   ;;  %s1695_s8 = smov 8  }
 0x1d8   : > { %1464 = dma.vmem_to_hbm [thread:$0]  (%p1808_p10), %s2203_s10, 2048, %s2201_s6, %s1062_s15, %s1694_s7, %s1694_s7, %s1695_s8  }
 0x1d9 PF: > { %s1093_s11 = sand.u32 1, %s1663_s12   ;;  %p2274_p12 = scmp.ne.s32.totalorder %s2265_s23, 0 }
 0x1da   : > { %p2275_p13 = scmp.ge.s32.totalorder %s1683_s17, 2  ;;  %s1094_s27 = scalar_lea.sflag [#allocation4], %s1093_s11 }
 0x1dc   : > { %p1475_p0 = pnand %p2275_p13, %p2274_p12 }
 0x1de   : > { %1658 = dma.done.wait (!%p1475_p0), %s1094_s27, 2048  }
 0x1df   : > { %1660 = vsyncadd (!%p1475_p0), %s1094_s27, 4294965248  ;;  %s20_s17 = sadd.s32 1, %s1683_s17   ;;  %s2276_s12 = smov %s1667_s13 }
 0x1e0   : > { %p17_p5 = scmp.ge.s32.totalorder %s20_s17, 4   ;;  %s2277_s13 = smov %s1671_s14 }
 0x1e1   : > { %s2278_s14 = smov %s1817_s5  ;;  %s2279_s15 = smov %s1679_s16 }
 0x1e2   : > { %s2280_s16 = smov %s2282_s28  ;;  %19 = sbr.rel (!%p17_p5) target bundleno = 7 (0x7), region = 86 }
 0x1e9   :  { %1099 = vsyncpa [#allocation3], 1 }
 0x1ea   :  { %1101 = vsyncpa [#allocation3 + $0x1], 1 }
 0x1eb   :  { %1102 = vsyncpa [#allocation6], 1 }
 0x1ec   :  { %1103 = vsyncpa [#allocation4], 1 }
 0x1ed   :  { %1105 = vsyncpa [#allocation4 + $0x1], 1 }

</bundles_post_ra>
